<compile_context>
chip_gen: v6e
topology: v6e:2x2x1
jax: 0.10.0
libtpu: 0.0.40
codegen_flags: <defaults>
</compile_context>

<pallas_src>
import functools

import jax
import jax.numpy as jnp
from jax.experimental import pallas as pl
from jax.experimental.pallas import tpu as pltpu


# ----------------------------------------------------------------------------
# Pallas kernel 1: heatmap NMS (3x3 max-pool, stride 1, pad 1; keep local maxima)
#   One grid step per batch element; the (C, H) axes are folded into sublanes,
#   W (padded to a multiple of 128) maps to lanes.
# ----------------------------------------------------------------------------
def _nms_kernel(hm_ref, out_ref, *, H, W):
    x = hm_ref[0]                                   # (C*H, Wpad)
    CH, Wpad = x.shape
    neg = jnp.asarray(-1e30, dtype=x.dtype)

    # Tiny boundary masks (broadcast in the selects); rowm is the row index *within*
    # an (H, W) plane so the sublane roll never leaks across channel boundaries.
    col = jax.lax.broadcasted_iota(jnp.int32, (1, Wpad), 1)
    rowm = jax.lax.broadcasted_iota(jnp.int32, (CH, 1), 0) % H

    # 3-wide max along W (lanes).  pltpu.roll matches jnp.roll semantics;
    # Wpad-1 == -1 (mod Wpad).  Padded columns never feed real columns because the
    # right neighbour of the last *real* column (col == W-1) is masked to -inf.
    left = jnp.where(col == 0, neg, pltpu.roll(x, 1, axis=1))          # x[.., j-1]
    right = jnp.where(col == W - 1, neg, pltpu.roll(x, Wpad - 1, axis=1))  # x[.., j+1]
    m = jnp.maximum(jnp.maximum(left, x), right)

    # 3-wide max along H (sublanes) of the column maxima.
    up = jnp.where(rowm == 0, neg, pltpu.roll(m, 1, axis=0))
    down = jnp.where(rowm == H - 1, neg, pltpu.roll(m, CH - 1, axis=0))
    m = jnp.maximum(jnp.maximum(up, m), down)

    # Keep only local maxima: single select (no bool->f32 convert + multiply).
    out_ref[0] = jnp.where(m == x, x, jnp.zeros_like(x))


def nms_hm(heatmap):
    B, C, H, W = heatmap.shape
    Wpad = ((W + 127) // 128) * 128
    hm = heatmap if Wpad == W else jnp.pad(
        heatmap, ((0, 0), (0, 0), (0, 0), (0, Wpad - W)))
    hm2 = hm.reshape(B, C * H, Wpad)

    # TODO(synk): on v7x with B == 1 an H-split would feed both TensorCores, but it
    # needs a one-row halo between the half-blocks to stay exact; not done here.
    out = pl.pallas_call(
        functools.partial(_nms_kernel, H=H, W=W),
        out_shape=jax.ShapeDtypeStruct((B, C * H, Wpad), heatmap.dtype),
        grid=(B,),
        in_specs=[pl.BlockSpec((1, C * H, Wpad), lambda b: (b, 0, 0))],
        out_specs=pl.BlockSpec((1, C * H, Wpad), lambda b: (b, 0, 0)),
        compiler_params=pltpu.CompilerParams(dimension_semantics=("parallel",)),
    )(hm2)

    out = out.reshape(B, C, H, Wpad)
    return out[..., :W] if Wpad != W else out


# ----------------------------------------------------------------------------
# Pallas kernel 2: per-detection decode.
#   packed rows (19): [depth_off, proj_off(2), dim_off(3), ori(2), c2d_off(2),
#                      dims2d(2), pts(2), dim_ref(3), cls, score]
#   output rows (14): [cls, alpha*, x1, y1, x2, y2, dims_rolled(3), loc(3), roty*, score]
#   (* filled by the in-jit XLA epilogue via arctan)
#   trans_mat^-1 / calib^-1 are read as scalars from SMEM (no per-detection repeat).
# ----------------------------------------------------------------------------
def _decode_kernel(packed_ref, tinv_ref, kinv_ref, out_ref, *, depth_ref):
    b = pl.program_id(0)
    p = packed_ref[0]                 # (19, Kpad)
    reg = p[0:12]
    pts = p[12:14]
    dref = p[14:17]
    cls = p[17:18]
    score = p[18:19]

    t = [tinv_ref[b, j] for j in range(9)]     # trans_mat^-1, row major scalars
    k = [kinv_ref[b, j] for j in range(9)]     # calib^-1,     row major scalars

    # depth decode
    depth = reg[0:1] * depth_ref[1] + depth_ref[0]

    # location decode: heatmap -> image (affine inverse), scale by depth, unproject.
    proj = pts + reg[1:3]
    px, py = proj[0:1], proj[1:2]
    img_x = t[0] * px + t[1] * py + t[2]
    img_y = t[3] * px + t[4] * py + t[5]
    img_w = t[6] * px + t[7] * py + t[8]
    sx, sy, sz = img_x * depth, img_y * depth, img_w * depth
    loc_x = k[0] * sx + k[1] * sy + k[2] * sz
    loc_y = k[3] * sx + k[4] * sy + k[5] * sz
    loc_z = k[6] * sx + k[7] * sy + k[8] * sz

    # dimension decode: dims = dim_ref * exp(offset), layout (l, h, w)
    dims = dref * jnp.exp(reg[3:6])
    # shift box bottom to ground: y += h / 2
    loc_y = loc_y + dims[1:2] * 0.5

    # 2D bbox decode (heatmap coords -> image coords via trans_mat^-1)
    c2d = proj + reg[8:10]
    wh = reg[10:12]
    tlx = c2d[0:1] - wh[0:1] * 0.5
    tly = c2d[1:2] - wh[1:2] * 0.5
    brx = c2d[0:1] + wh[0:1] * 0.5
    bry = c2d[1:2] + wh[1:2] * 0.5
    x1 = t[0] * tlx + t[1] * tly + t[2]
    y1 = t[3] * tlx + t[4] * tly + t[5]
    x2 = t[0] * brx + t[1] * bry + t[2]
    y2 = t[3] * brx + t[4] * bry + t[5]

    zeros = jnp.zeros_like(depth)

    # dims.roll(shifts=-1, dims=1): (l, h, w) -> (h, w, l)
    out_ref[0] = jnp.concatenate(
        [cls, zeros, x1, y1, x2, y2,
         dims[1:2], dims[2:3], dims[0:1],
         loc_x, loc_y, loc_z, zeros, score], axis=0)


def decode_detections(packed, tinv, kinv, depth_ref):
    B, F, Kpad = packed.shape
    kernel = functools.partial(_decode_kernel, depth_ref=tuple(depth_ref))
    return pl.pallas_call(
        kernel,
        out_shape=jax.ShapeDtypeStruct((B, 14, Kpad), jnp.float32),
        grid=(B,),
        in_specs=[
            pl.BlockSpec((1, F, Kpad), lambda b: (b, 0, 0)),
            pl.BlockSpec(memory_space=pltpu.MemorySpace.SMEM),   # (B, 9) trans_mat^-1
            pl.BlockSpec(memory_space=pltpu.MemorySpace.SMEM),   # (B, 9) calib^-1
        ],
        out_specs=pl.BlockSpec((1, 14, Kpad), lambda b: (b, 0, 0)),
        compiler_params=pltpu.CompilerParams(dimension_semantics=("parallel",)),
    )(packed, tinv, kinv)


# ----------------------------------------------------------------------------
# In-jit JAX glue (top-k, gather, 3x3 inverse, orientation arctan)
# ----------------------------------------------------------------------------
def _inv3x3(m):
    """Closed-form batched 3x3 inverse (adjugate / det), returns (B, 9) row-major."""
    a, b, c = m[:, 0, 0], m[:, 0, 1], m[:, 0, 2]
    d, e, f = m[:, 1, 0], m[:, 1, 1], m[:, 1, 2]
    g, h, i = m[:, 2, 0], m[:, 2, 1], m[:, 2, 2]
    A = e * i - f * h
    B_ = c * h - b * i
    C = b * f - c * e
    D = f * g - d * i
    E = a * i - c * g
    F = c * d - a * f
    G = d * h - e * g
    H = b * g - a * h
    I = a * e - b * d
    det = a * A + b * D + c * G
    return jnp.stack([A, B_, C, D, E, F, G, H, I], axis=-1) / det[:, None]


def select_topk(heat, K):
    B, C, H, W = heat.shape
    flat = heat.reshape(B, C * H * W)
    scores, inds = jax.lax.top_k(flat, K)                   # (B, K)
    clses = (inds // (H * W)).astype(jnp.float32)
    spatial = inds % (H * W)
    ys = (spatial // W).astype(jnp.float32)
    xs = (spatial % W).astype(jnp.float32)
    return scores, spatial, clses, ys, xs


def _postprocess_pipeline(pred_heatmap, pred_regression, trans_mat, calib,
                          *, K, det_threshold, depth_ref, dim_ref):
    B, _, H, W = pred_heatmap.shape
    C_reg = pred_regression.shape[1]
    N = B * K
    Kpad = ((K + 127) // 128) * 128

    heat = nms_hm(pred_heatmap)                                   # Pallas kernel 1
    scores, indexs, clses, ys, xs = select_topk(heat, K)          # (B, K)

    # POI gather directly on the flattened spatial axis -> (B, 12, K); no (B, H*W, C)
    # transpose is materialised and the result is already [features, detections].
    fm = pred_regression.reshape(B, C_reg, H * W)
    idx = jnp.broadcast_to(indexs[:, None, :], (B, C_reg, K))
    pois = jnp.take_along_axis(fm, idx, axis=2)                   # (B, 12, K)

    # Pack all per-detection features into ONE lane-dense operand (B, 19, Kpad).
    pts = jnp.stack([xs, ys], axis=1)                             # (B, 2, K)
    dimref = jnp.transpose(dim_ref[clses.astype(jnp.int32)], (0, 2, 1))   # (B, 3, K)
    packed = jnp.concatenate(
        [pois, pts, dimref, clses[:, None, :], scores[:, None, :]], axis=1)
    packed = jnp.pad(packed, ((0, 0), (0, 0), (0, Kpad - K)))

    # Device-side 3x3 inverses (no host sync); passed whole via SMEM to the kernel.
    tinv = _inv3x3(trans_mat)                                     # (B, 9)
    kinv = _inv3x3(calib)                                         # (B, 9)

    res = decode_detections(packed, tinv, kinv, depth_ref)        # Pallas kernel 2
    res = res[:, :, :K]                                           # (B, 14, K)
    res = jnp.transpose(res, (0, 2, 1)).reshape(N, 14)            # (N, 14)

    # TODO(synk): arctan-based orientation decode stays in XLA (atan has no Mosaic
    # lowering); formula matches the torch reference atan(sin/(cos+1e-7)) +- pi/2,
    # including its quadrant behaviour near cos ~ 0 (arctan2 would differ slightly).
    sin_o = pois[:, 6, :].reshape(-1)
    cos_o = pois[:, 7, :].reshape(-1)
    alpha = jnp.arctan(sin_o / (cos_o + 1e-7))
    alpha = alpha + jnp.where(cos_o >= 0, -jnp.pi / 2, jnp.pi / 2)
    ray = jnp.arctan(res[:, 9] / (res[:, 11] + 1e-7))
    roty = alpha + ray
    roty = jnp.where(roty > jnp.pi, roty - 2 * jnp.pi, roty)
    roty = jnp.where(roty < -jnp.pi, roty + 2 * jnp.pi, roty)
    alpha = jnp.where(alpha > jnp.pi, alpha - 2 * jnp.pi, alpha)
    alpha = jnp.where(alpha < -jnp.pi, alpha + 2 * jnp.pi, alpha)
    res = res.at[:, 1].set(alpha).at[:, 12].set(roty)

    keep = scores.reshape(-1) > det_threshold
    return res, keep                                              # (N, 14), (N,)


class SyntheticSMOKECoder:
    """Deterministic, SMOKE-like output coder constants (synthetic, not a checkpoint)."""
    depth_ref = (28.01, 16.32)
    dim_ref = jnp.asarray([[3.88, 1.63, 1.53],
                           [0.84, 1.76, 0.66],
                           [1.76, 1.74, 0.60]], jnp.float32)


class PostProcessor:
    def __init__(self, output_coder, det_threshold, max_detection):
        self.output_coder = output_coder
        self.det_threshold = float(det_threshold)
        self.max_detection = int(max_detection)
        # One jitted device-side pipeline (NMS -> top-k -> gather -> decode -> orient).
        self._pipeline = jax.jit(functools.partial(
            _postprocess_pipeline,
            K=self.max_detection,
            det_threshold=self.det_threshold,
            depth_ref=tuple(float(v) for v in output_coder.depth_ref),
            dim_ref=jnp.asarray(output_coder.dim_ref, jnp.float32)))

    def __call__(self, predictions, meta):
        pred_heatmap, pred_regression = predictions
        res, keep = self._pipeline(
            pred_heatmap, pred_regression,
            jnp.asarray(meta['trans_mat'], jnp.float32),
            jnp.asarray(meta['calib'], jnp.float32))
        # Single device->host sync: dynamic-shape score-threshold filtering (matching
        # the torch reference, incl. the rank-1 empty tensor when nothing survives).
        res_np, keep_np = jax.device_get((res, keep))
        if not bool(keep_np.any()):
            return jnp.zeros((0,), jnp.float32)
        return jnp.asarray(res_np[keep_np])


# ----------------------------------------------------------------------------
if __name__ == "__main__":
    key = jax.random.PRNGKey(0)
    B, C_CLS, C_REG, H, W = 2, 3, 12, 16, 16

    k1, k2 = jax.random.split(key)
    pred_heatmap = jax.nn.sigmoid(jax.random.normal(k1, (B, C_CLS, H, W), jnp.float32))
    pred_regression = 0.1 * jax.random.normal(k2, (B, C_REG, H, W), jnp.float32)

    # deterministic meta: intrinsics (3x3) and image->heatmap affine (downsample 4x)
    calib = jnp.tile(jnp.asarray([[[140.0, 0.0, 64.0],
                                   [0.0, 140.0, 32.0],
                                   [0.0, 0.0, 1.0]]], jnp.float32), (B, 1, 1))
    trans_mat = jnp.tile(jnp.asarray([[[0.25, 0.0, 0.0],
                                       [0.0, 0.25, 0.0],
                                       [0.0, 0.0, 1.0]]], jnp.float32), (B, 1, 1))
    size = jnp.tile(jnp.asarray([[W * 4, H * 4]], jnp.float32), (B, 1))
    meta = dict(trans_mat=trans_mat, calib=calib, size=size)

    post = PostProcessor(SyntheticSMOKECoder(), det_threshold=0.25, max_detection=8)
    result = post((pred_heatmap, pred_regression), meta)
    jax.block_until_ready(result)
    print("KERNEL_OK")
</pallas_src>

<mosaic_0001>
module attributes {stable_mosaic.version = 11 : i64} {
  func.func @_nms_kernel(%arg0: i32, %arg1: memref<1x48x128xf32, #tpu.memory_space<vmem>>, %arg2: memref<1x48x128xf32, #tpu.memory_space<vmem>>) attributes {dimension_semantics = [#tpu.dimension_semantics<parallel>], iteration_bounds = array<i64: 2>, scalar_prefetch = 0 : i64, scratch_operands = 0 : i64, tpu.core_type = #tpu.core_type<tc>, window_params = [{transform_indices = @transform_0, window_bounds = array<i64: 1, 48, 128>}, {transform_indices = @transform_1, window_bounds = array<i64: 1, 48, 128>}]} {
    %c0 = arith.constant 0 : index
    %c0_0 = arith.constant 0 : index
    %c0_1 = arith.constant 0 : index
    %0 = vector.load %arg1[%c0, %c0_0, %c0_1] : memref<1x48x128xf32, #tpu.memory_space<vmem>>, vector<1x48x128xf32>
    %1 = vector.shape_cast %0 : vector<1x48x128xf32> to vector<48x128xf32>
    %2 = tpu.iota {dimensions = array<i32: 1>} : vector<1x128xi32>
    %3 = tpu.iota {dimensions = array<i32: 0>} : vector<48x1xi32>
    %c16_i32 = arith.constant 16 : i32
    %c0_i32 = arith.constant 0 : i32
    %4 = arith.cmpi eq, %c16_i32, %c0_i32 : i32
    %c1_i32 = arith.constant 1 : i32
    %5 = arith.select %4, %c1_i32, %c16_i32 : i32
    %6 = vector.broadcast %5 : i32 to vector<48x1xi32>
    %7 = arith.remsi %3, %6 : vector<48x1xi32>
    %c0_i32_2 = arith.constant 0 : i32
    %8 = vector.broadcast %c0_i32_2 : i32 to vector<48x1xi32>
    %9 = arith.cmpi ne, %7, %8 : vector<48x1xi32>
    %c0_i32_3 = arith.constant 0 : i32
    %10 = vector.broadcast %c0_i32_3 : i32 to vector<48x1xi32>
    %11 = arith.cmpi slt, %7, %10 : vector<48x1xi32>
    %c0_i32_4 = arith.constant 0 : i32
    %12 = arith.cmpi slt, %5, %c0_i32_4 : i32
    %13 = vector.broadcast %12 : i1 to vector<48x1xi1>
    %14 = vector.broadcast %13 : vector<48x1xi1> to vector<48x1xi1>
    %15 = arith.xori %11, %14 : vector<48x1xi1>
    %16 = arith.andi %15, %9 : vector<48x1xi1>
    %17 = vector.broadcast %5 : i32 to vector<48x1xi32>
    %18 = arith.addi %7, %17 : vector<48x1xi32>
    %19 = arith.select %16, %18, %7 : vector<48x1xi1>, vector<48x1xi32>
    %c0_i32_5 = arith.constant 0 : i32
    %20 = vector.broadcast %c0_i32_5 : i32 to vector<1x128xi32>
    %21 = arith.cmpi eq, %2, %20 : vector<1x128xi32>
    %c1_i32_6 = arith.constant 1 : i32
    %22 = tpu.dynamic_rotate %1 by %c1_i32_6 dim 1 : vector<48x128xf32>, i32 -> vector<48x128xf32>
    %cst = arith.constant -1.000000e+30 : f32
    %23 = vector.shape_cast %21 : vector<1x128xi1> to vector<1x128xi1>
    %24 = vector.broadcast %23 : vector<1x128xi1> to vector<48x128xi1>
    %25 = vector.broadcast %cst : f32 to vector<48x128xf32>
    %26 = arith.select %24, %25, %22 : vector<48x128xi1>, vector<48x128xf32>
    %c15_i32 = arith.constant 15 : i32
    %27 = vector.broadcast %c15_i32 : i32 to vector<1x128xi32>
    %28 = arith.cmpi eq, %2, %27 : vector<1x128xi32>
    %c127_i32 = arith.constant 127 : i32
    %29 = tpu.dynamic_rotate %1 by %c127_i32 dim 1 : vector<48x128xf32>, i32 -> vector<48x128xf32>
    %cst_7 = arith.constant -1.000000e+30 : f32
    %30 = vector.shape_cast %28 : vector<1x128xi1> to vector<1x128xi1>
    %31 = vector.broadcast %30 : vector<1x128xi1> to vector<48x128xi1>
    %32 = vector.broadcast %cst_7 : f32 to vector<48x128xf32>
    %33 = arith.select %31, %32, %29 : vector<48x128xi1>, vector<48x128xf32>
    %34 = arith.maximumf %26, %1 : vector<48x128xf32>
    %35 = arith.maximumf %34, %33 : vector<48x128xf32>
    %c0_i32_8 = arith.constant 0 : i32
    %36 = vector.broadcast %c0_i32_8 : i32 to vector<48x1xi32>
    %37 = arith.cmpi eq, %19, %36 : vector<48x1xi32>
    %c1_i32_9 = arith.constant 1 : i32
    %38 = tpu.dynamic_rotate %35 by %c1_i32_9 dim 0 : vector<48x128xf32>, i32 -> vector<48x128xf32>
    %cst_10 = arith.constant -1.000000e+30 : f32
    %39 = vector.shape_cast %37 : vector<48x1xi1> to vector<48x1xi1>
    %40 = vector.broadcast %39 : vector<48x1xi1> to vector<48x128xi1>
    %41 = vector.broadcast %cst_10 : f32 to vector<48x128xf32>
    %42 = arith.select %40, %41, %38 : vector<48x128xi1>, vector<48x128xf32>
    %c15_i32_11 = arith.constant 15 : i32
    %43 = vector.broadcast %c15_i32_11 : i32 to vector<48x1xi32>
    %44 = arith.cmpi eq, %19, %43 : vector<48x1xi32>
    %c47_i32 = arith.constant 47 : i32
    %45 = tpu.dynamic_rotate %35 by %c47_i32 dim 0 : vector<48x128xf32>, i32 -> vector<48x128xf32>
    %cst_12 = arith.constant -1.000000e+30 : f32
    %46 = vector.shape_cast %44 : vector<48x1xi1> to vector<48x1xi1>
    %47 = vector.broadcast %46 : vector<48x1xi1> to vector<48x128xi1>
    %48 = vector.broadcast %cst_12 : f32 to vector<48x128xf32>
    %49 = arith.select %47, %48, %45 : vector<48x128xi1>, vector<48x128xf32>
    %50 = arith.maximumf %42, %35 : vector<48x128xf32>
    %51 = arith.maximumf %50, %49 : vector<48x128xf32>
    %52 = arith.cmpf oeq, %51, %1 : vector<48x128xf32>
    %cst_13 = arith.constant 0.000000e+00 : f32
    %53 = vector.broadcast %cst_13 : f32 to vector<48x128xf32>
    %54 = arith.select %52, %1, %53 : vector<48x128xi1>, vector<48x128xf32>
    %c0_14 = arith.constant 0 : index
    %c0_15 = arith.constant 0 : index
    %c0_16 = arith.constant 0 : index
    %55 = vector.load %arg2[%c0_14, %c0_15, %c0_16] : memref<1x48x128xf32, #tpu.memory_space<vmem>>, vector<1x48x128xf32>
    %56 = vector.shape_cast %55 : vector<1x48x128xf32> to vector<48x128xf32>
    %57 = vector.shape_cast %54 : vector<48x128xf32> to vector<1x48x128xf32>
    tpu.vector_store %arg2[%c0_14, %c0_15, %c0_16], %57 {strides = array<i32>} : memref<1x48x128xf32, #tpu.memory_space<vmem>>, vector<1x48x128xf32>,
    return
  }
  func.func @transform_0(%arg0: i32) -> (i32, i32, i32) {
    %c0_i32 = arith.constant 0 : i32
    %c0_i32_0 = arith.constant 0 : i32
    %c0_i32_1 = arith.constant 0 : i32
    return %arg0, %c0_i32, %c0_i32_0 : i32, i32, i32
  }
  func.func @transform_1(%arg0: i32) -> (i32, i32, i32) {
    %c0_i32 = arith.constant 0 : i32
    %c0_i32_0 = arith.constant 0 : i32
    %c0_i32_1 = arith.constant 0 : i32
    return %arg0, %c0_i32, %c0_i32_0 : i32, i32, i32
  }
}

module attributes {stable_mosaic.version = 11 : i64} {
  func.func @_decode_kernel(%arg0: i32, %arg1: memref<1x19x128xf32, #tpu.memory_space<vmem>>, %arg2: memref<2x9xf32, #tpu.memory_space<smem>>, %arg3: memref<2x9xf32, #tpu.memory_space<smem>>, %arg4: memref<1x14x128xf32, #tpu.memory_space<vmem>>) attributes {dimension_semantics = [#tpu.dimension_semantics<parallel>], iteration_bounds = array<i64: 2>, scalar_prefetch = 0 : i64, scratch_operands = 0 : i64, tpu.core_type = #tpu.core_type<tc>, window_params = [{transform_indices = @transform_0, window_bounds = array<i64: 1, 19, 128>}, {transform_indices = @transform_1, window_bounds = array<i64: 2, 9>}, {transform_indices = @transform_2, window_bounds = array<i64: 2, 9>}, {transform_indices = @transform_3, window_bounds = array<i64: 1, 14, 128>}]} {
    %c0 = arith.constant 0 : index
    %c0_0 = arith.constant 0 : index
    %c0_1 = arith.constant 0 : index
    %0 = vector.load %arg1[%c0, %c0_0, %c0_1] : memref<1x19x128xf32, #tpu.memory_space<vmem>>, vector<1x19x128xf32>
    %1 = vector.shape_cast %0 : vector<1x19x128xf32> to vector<19x128xf32>
    %2 = vector.extract_strided_slice %1 {offsets = [0, 0], sizes = [12, 128], strides = [1, 1]} : vector<19x128xf32> to vector<12x128xf32>
    %3 = vector.extract_strided_slice %1 {offsets = [12, 0], sizes = [2, 128], strides = [1, 1]} : vector<19x128xf32> to vector<2x128xf32>
    %4 = vector.extract_strided_slice %1 {offsets = [14, 0], sizes = [3, 128], strides = [1, 1]} : vector<19x128xf32> to vector<3x128xf32>
    %5 = vector.extract_strided_slice %1 {offsets = [17, 0], sizes = [1, 128], strides = [1, 1]} : vector<19x128xf32> to vector<1x128xf32>
    %6 = vector.extract_strided_slice %1 {offsets = [18, 0], sizes = [1, 128], strides = [1, 1]} : vector<19x128xf32> to vector<1x128xf32>
    %7 = arith.index_cast %arg0 : i32 to index
    %c0_2 = arith.constant 0 : index
    %8 = memref.load %arg2[%7, %c0_2] : memref<2x9xf32, #tpu.memory_space<smem>>
    %9 = arith.index_cast %arg0 : i32 to index
    %c1 = arith.constant 1 : index
    %10 = memref.load %arg2[%9, %c1] : memref<2x9xf32, #tpu.memory_space<smem>>
    %11 = arith.index_cast %arg0 : i32 to index
    %c2 = arith.constant 2 : index
    %12 = memref.load %arg2[%11, %c2] : memref<2x9xf32, #tpu.memory_space<smem>>
    %13 = arith.index_cast %arg0 : i32 to index
    %c3 = arith.constant 3 : index
    %14 = memref.load %arg2[%13, %c3] : memref<2x9xf32, #tpu.memory_space<smem>>
    %15 = arith.index_cast %arg0 : i32 to index
    %c4 = arith.constant 4 : index
    %16 = memref.load %arg2[%15, %c4] : memref<2x9xf32, #tpu.memory_space<smem>>
    %17 = arith.index_cast %arg0 : i32 to index
    %c5 = arith.constant 5 : index
    %18 = memref.load %arg2[%17, %c5] : memref<2x9xf32, #tpu.memory_space<smem>>
    %19 = arith.index_cast %arg0 : i32 to index
    %c6 = arith.constant 6 : index
    %20 = memref.load %arg2[%19, %c6] : memref<2x9xf32, #tpu.memory_space<smem>>
    %21 = arith.index_cast %arg0 : i32 to index
    %c7 = arith.constant 7 : index
    %22 = memref.load %arg2[%21, %c7] : memref<2x9xf32, #tpu.memory_space<smem>>
    %23 = arith.index_cast %arg0 : i32 to index
    %c8 = arith.constant 8 : index
    %24 = memref.load %arg2[%23, %c8] : memref<2x9xf32, #tpu.memory_space<smem>>
    %25 = arith.index_cast %arg0 : i32 to index
    %c0_3 = arith.constant 0 : index
    %26 = memref.load %arg3[%25, %c0_3] : memref<2x9xf32, #tpu.memory_space<smem>>
    %27 = arith.index_cast %arg0 : i32 to index
    %c1_4 = arith.constant 1 : index
    %28 = memref.load %arg3[%27, %c1_4] : memref<2x9xf32, #tpu.memory_space<smem>>
    %29 = arith.index_cast %arg0 : i32 to index
    %c2_5 = arith.constant 2 : index
    %30 = memref.load %arg3[%29, %c2_5] : memref<2x9xf32, #tpu.memory_space<smem>>
    %31 = arith.index_cast %arg0 : i32 to index
    %c3_6 = arith.constant 3 : index
    %32 = memref.load %arg3[%31, %c3_6] : memref<2x9xf32, #tpu.memory_space<smem>>
    %33 = arith.index_cast %arg0 : i32 to index
    %c4_7 = arith.constant 4 : index
    %34 = memref.load %arg3[%33, %c4_7] : memref<2x9xf32, #tpu.memory_space<smem>>
    %35 = arith.index_cast %arg0 : i32 to index
    %c5_8 = arith.constant 5 : index
    %36 = memref.load %arg3[%35, %c5_8] : memref<2x9xf32, #tpu.memory_space<smem>>
    %37 = arith.index_cast %arg0 : i32 to index
    %c6_9 = arith.constant 6 : index
    %38 = memref.load %arg3[%37, %c6_9] : memref<2x9xf32, #tpu.memory_space<smem>>
    %39 = arith.index_cast %arg0 : i32 to index
    %c7_10 = arith.constant 7 : index
    %40 = memref.load %arg3[%39, %c7_10] : memref<2x9xf32, #tpu.memory_space<smem>>
    %41 = arith.index_cast %arg0 : i32 to index
    %c8_11 = arith.constant 8 : index
    %42 = memref.load %arg3[%41, %c8_11] : memref<2x9xf32, #tpu.memory_space<smem>>
    %43 = vector.extract_strided_slice %2 {offsets = [0, 0], sizes = [1, 128], strides = [1, 1]} : vector<12x128xf32> to vector<1x128xf32>
    %cst = arith.constant 1.632000e+01 : f32
    %44 = vector.broadcast %cst : f32 to vector<1x128xf32>
    %45 = arith.mulf %43, %44 : vector<1x128xf32>
    %cst_12 = arith.constant 2.801000e+01 : f32
    %46 = vector.broadcast %cst_12 : f32 to vector<1x128xf32>
    %47 = arith.addf %45, %46 : vector<1x128xf32>
    %48 = vector.extract_strided_slice %2 {offsets = [1, 0], sizes = [2, 128], strides = [1, 1]} : vector<12x128xf32> to vector<2x128xf32>
    %49 = arith.addf %3, %48 : vector<2x128xf32>
    %50 = vector.extract_strided_slice %49 {offsets = [0, 0], sizes = [1, 128], strides = [1, 1]} : vector<2x128xf32> to vector<1x128xf32>
    %51 = vector.extract_strided_slice %49 {offsets = [1, 0], sizes = [1, 128], strides = [1, 1]} : vector<2x128xf32> to vector<1x128xf32>
    %52 = vector.broadcast %8 : f32 to vector<1x128xf32>
    %53 = arith.mulf %52, %50 : vector<1x128xf32>
    %54 = vector.broadcast %10 : f32 to vector<1x128xf32>
    %55 = arith.mulf %54, %51 : vector<1x128xf32>
    %56 = arith.addf %53, %55 : vector<1x128xf32>
    %57 = vector.broadcast %12 : f32 to vector<1x128xf32>
    %58 = arith.addf %56, %57 : vector<1x128xf32>
    %59 = vector.broadcast %14 : f32 to vector<1x128xf32>
    %60 = arith.mulf %59, %50 : vector<1x128xf32>
    %61 = vector.broadcast %16 : f32 to vector<1x128xf32>
    %62 = arith.mulf %61, %51 : vector<1x128xf32>
    %63 = arith.addf %60, %62 : vector<1x128xf32>
    %64 = vector.broadcast %18 : f32 to vector<1x128xf32>
    %65 = arith.addf %63, %64 : vector<1x128xf32>
    %66 = vector.broadcast %20 : f32 to vector<1x128xf32>
    %67 = arith.mulf %66, %50 : vector<1x128xf32>
    %68 = vector.broadcast %22 : f32 to vector<1x128xf32>
    %69 = arith.mulf %68, %51 : vector<1x128xf32>
    %70 = arith.addf %67, %69 : vector<1x128xf32>
    %71 = vector.broadcast %24 : f32 to vector<1x128xf32>
    %72 = arith.addf %70, %71 : vector<1x128xf32>
    %73 = arith.mulf %58, %47 : vector<1x128xf32>
    %74 = arith.mulf %65, %47 : vector<1x128xf32>
    %75 = arith.mulf %72, %47 : vector<1x128xf32>
    %76 = vector.broadcast %26 : f32 to vector<1x128xf32>
    %77 = arith.mulf %76, %73 : vector<1x128xf32>
    %78 = vector.broadcast %28 : f32 to vector<1x128xf32>
    %79 = arith.mulf %78, %74 : vector<1x128xf32>
    %80 = arith.addf %77, %79 : vector<1x128xf32>
    %81 = vector.broadcast %30 : f32 to vector<1x128xf32>
    %82 = arith.mulf %81, %75 : vector<1x128xf32>
    %83 = arith.addf %80, %82 : vector<1x128xf32>
    %84 = vector.broadcast %32 : f32 to vector<1x128xf32>
    %85 = arith.mulf %84, %73 : vector<1x128xf32>
    %86 = vector.broadcast %34 : f32 to vector<1x128xf32>
    %87 = arith.mulf %86, %74 : vector<1x128xf32>
    %88 = arith.addf %85, %87 : vector<1x128xf32>
    %89 = vector.broadcast %36 : f32 to vector<1x128xf32>
    %90 = arith.mulf %89, %75 : vector<1x128xf32>
    %91 = arith.addf %88, %90 : vector<1x128xf32>
    %92 = vector.broadcast %38 : f32 to vector<1x128xf32>
    %93 = arith.mulf %92, %73 : vector<1x128xf32>
    %94 = vector.broadcast %40 : f32 to vector<1x128xf32>
    %95 = arith.mulf %94, %74 : vector<1x128xf32>
    %96 = arith.addf %93, %95 : vector<1x128xf32>
    %97 = vector.broadcast %42 : f32 to vector<1x128xf32>
    %98 = arith.mulf %97, %75 : vector<1x128xf32>
    %99 = arith.addf %96, %98 : vector<1x128xf32>
    %100 = vector.extract_strided_slice %2 {offsets = [3, 0], sizes = [3, 128], strides = [1, 1]} : vector<12x128xf32> to vector<3x128xf32>
    %101 = math.exp %100 : vector<3x128xf32>
    %102 = arith.mulf %4, %101 : vector<3x128xf32>
    %103 = vector.extract_strided_slice %102 {offsets = [1, 0], sizes = [1, 128], strides = [1, 1]} : vector<3x128xf32> to vector<1x128xf32>
    %cst_13 = arith.constant 5.000000e-01 : f32
    %104 = vector.broadcast %cst_13 : f32 to vector<1x128xf32>
    %105 = arith.mulf %103, %104 : vector<1x128xf32>
    %106 = arith.addf %91, %105 : vector<1x128xf32>
    %107 = vector.extract_strided_slice %2 {offsets = [8, 0], sizes = [2, 128], strides = [1, 1]} : vector<12x128xf32> to vector<2x128xf32>
    %108 = arith.addf %49, %107 : vector<2x128xf32>
    %109 = vector.extract_strided_slice %2 {offsets = [10, 0], sizes = [2, 128], strides = [1, 1]} : vector<12x128xf32> to vector<2x128xf32>
    %110 = vector.extract_strided_slice %108 {offsets = [0, 0], sizes = [1, 128], strides = [1, 1]} : vector<2x128xf32> to vector<1x128xf32>
    %111 = vector.extract_strided_slice %109 {offsets = [0, 0], sizes = [1, 128], strides = [1, 1]} : vector<2x128xf32> to vector<1x128xf32>
    %cst_14 = arith.constant 5.000000e-01 : f32
    %112 = vector.broadcast %cst_14 : f32 to vector<1x128xf32>
    %113 = arith.mulf %111, %112 : vector<1x128xf32>
    %114 = arith.subf %110, %113 : vector<1x128xf32>
    %115 = vector.extract_strided_slice %108 {offsets = [1, 0], sizes = [1, 128], strides = [1, 1]} : vector<2x128xf32> to vector<1x128xf32>
    %116 = vector.extract_strided_slice %109 {offsets = [1, 0], sizes = [1, 128], strides = [1, 1]} : vector<2x128xf32> to vector<1x128xf32>
    %cst_15 = arith.constant 5.000000e-01 : f32
    %117 = vector.broadcast %cst_15 : f32 to vector<1x128xf32>
    %118 = arith.mulf %116, %117 : vector<1x128xf32>
    %119 = arith.subf %115, %118 : vector<1x128xf32>
    %120 = vector.extract_strided_slice %108 {offsets = [0, 0], sizes = [1, 128], strides = [1, 1]} : vector<2x128xf32> to vector<1x128xf32>
    %121 = vector.extract_strided_slice %109 {offsets = [0, 0], sizes = [1, 128], strides = [1, 1]} : vector<2x128xf32> to vector<1x128xf32>
    %cst_16 = arith.constant 5.000000e-01 : f32
    %122 = vector.broadcast %cst_16 : f32 to vector<1x128xf32>
    %123 = arith.mulf %121, %122 : vector<1x128xf32>
    %124 = arith.addf %120, %123 : vector<1x128xf32>
    %125 = vector.extract_strided_slice %108 {offsets = [1, 0], sizes = [1, 128], strides = [1, 1]} : vector<2x128xf32> to vector<1x128xf32>
    %126 = vector.extract_strided_slice %109 {offsets = [1, 0], sizes = [1, 128], strides = [1, 1]} : vector<2x128xf32> to vector<1x128xf32>
    %cst_17 = arith.constant 5.000000e-01 : f32
    %127 = vector.broadcast %cst_17 : f32 to vector<1x128xf32>
    %128 = arith.mulf %126, %127 : vector<1x128xf32>
    %129 = arith.addf %125, %128 : vector<1x128xf32>
    %130 = vector.broadcast %8 : f32 to vector<1x128xf32>
    %131 = arith.mulf %130, %114 : vector<1x128xf32>
    %132 = vector.broadcast %10 : f32 to vector<1x128xf32>
    %133 = arith.mulf %132, %119 : vector<1x128xf32>
    %134 = arith.addf %131, %133 : vector<1x128xf32>
    %135 = vector.broadcast %12 : f32 to vector<1x128xf32>
    %136 = arith.addf %134, %135 : vector<1x128xf32>
    %137 = vector.broadcast %14 : f32 to vector<1x128xf32>
    %138 = arith.mulf %137, %114 : vector<1x128xf32>
    %139 = vector.broadcast %16 : f32 to vector<1x128xf32>
    %140 = arith.mulf %139, %119 : vector<1x128xf32>
    %141 = arith.addf %138, %140 : vector<1x128xf32>
    %142 = vector.broadcast %18 : f32 to vector<1x128xf32>
    %143 = arith.addf %141, %142 : vector<1x128xf32>
    %144 = vector.broadcast %8 : f32 to vector<1x128xf32>
    %145 = arith.mulf %144, %124 : vector<1x128xf32>
    %146 = vector.broadcast %10 : f32 to vector<1x128xf32>
    %147 = arith.mulf %146, %129 : vector<1x128xf32>
    %148 = arith.addf %145, %147 : vector<1x128xf32>
    %149 = vector.broadcast %12 : f32 to vector<1x128xf32>
    %150 = arith.addf %148, %149 : vector<1x128xf32>
    %151 = vector.broadcast %14 : f32 to vector<1x128xf32>
    %152 = arith.mulf %151, %124 : vector<1x128xf32>
    %153 = vector.broadcast %16 : f32 to vector<1x128xf32>
    %154 = arith.mulf %153, %129 : vector<1x128xf32>
    %155 = arith.addf %152, %154 : vector<1x128xf32>
    %156 = vector.broadcast %18 : f32 to vector<1x128xf32>
    %157 = arith.addf %155, %156 : vector<1x128xf32>
    %cst_18 = arith.constant 0.000000e+00 : f32
    %158 = vector.broadcast %cst_18 : f32 to vector<1x128xf32>
    %159 = vector.extract_strided_slice %102 {offsets = [1, 0], sizes = [1, 128], strides = [1, 1]} : vector<3x128xf32> to vector<1x128xf32>
    %160 = vector.extract_strided_slice %102 {offsets = [2, 0], sizes = [1, 128], strides = [1, 1]} : vector<3x128xf32> to vector<1x128xf32>
    %161 = vector.extract_strided_slice %102 {offsets = [0, 0], sizes = [1, 128], strides = [1, 1]} : vector<3x128xf32> to vector<1x128xf32>
    %162 = tpu.concatenate %5, %158, %136, %143, %150, %157, %159, %160, %161, %83, %106, %99, %158, %6 in 0 : vector<1x128xf32>, vector<1x128xf32>, vector<1x128xf32>, vector<1x128xf32>, vector<1x128xf32>, vector<1x128xf32>, vector<1x128xf32>, vector<1x128xf32>, vector<1x128xf32>, vector<1x128xf32>, vector<1x128xf32>, vector<1x128xf32>, vector<1x128xf32>, vector<1x128xf32> -> vector<14x128xf32>
    %c0_19 = arith.constant 0 : index
    %c0_20 = arith.constant 0 : index
    %c0_21 = arith.constant 0 : index
    %163 = vector.load %arg4[%c0_19, %c0_20, %c0_21] : memref<1x14x128xf32, #tpu.memory_space<vmem>>, vector<1x14x128xf32>
    %164 = vector.shape_cast %163 : vector<1x14x128xf32> to vector<14x128xf32>
    %165 = vector.shape_cast %162 : vector<14x128xf32> to vector<1x14x128xf32>
    tpu.vector_store %arg4[%c0_19, %c0_20, %c0_21], %165 {strides = array<i32>} : memref<1x14x128xf32, #tpu.memory_space<vmem>>, vector<1x14x128xf32>,
    return
  }
  func.func @transform_0(%arg0: i32) -> (i32, i32, i32) {
    %c0_i32 = arith.constant 0 : i32
    %c0_i32_0 = arith.constant 0 : i32
    %c0_i32_1 = arith.constant 0 : i32
    return %arg0, %c0_i32, %c0_i32_0 : i32, i32, i32
  }
  func.func @transform_1(%arg0: i32) -> (i32, i32) {
    %c0_i32 = arith.constant 0 : i32
    %c0_i32_0 = arith.constant 0 : i32
    %c0_i32_1 = arith.constant 0 : i32
    return %c0_i32, %c0_i32_0 : i32, i32
  }
  func.func @transform_2(%arg0: i32) -> (i32, i32) {
    %c0_i32 = arith.constant 0 : i32
    %c0_i32_0 = arith.constant 0 : i32
    %c0_i32_1 = arith.constant 0 : i32
    return %c0_i32, %c0_i32_0 : i32, i32
  }
  func.func @transform_3(%arg0: i32) -> (i32, i32, i32) {
    %c0_i32 = arith.constant 0 : i32
    %c0_i32_0 = arith.constant 0 : i32
    %c0_i32_1 = arith.constant 0 : i32
    return %arg0, %c0_i32, %c0_i32_0 : i32, i32, i32
  }
}

</mosaic_0001>

<bundles_post_ra>
// kernel: custom-call
= control target key start
LH: loop header
LB: loop body
LE: loop exit
PB: predicated region body
PF: predicated region fallthrough
CT: control target
= control target key end

     0   :  { %v1094_v0 = vmov 2147483648   ;;  %v1095_v1 = vmov 2147483647   ;;  %s1219_s0 = inlined_call_operand.vmem [shape: f32[2,768], index: 0, kind: input, shape index: {}]   ;;  %s1220_s1 = inlined_call_operand.vmem [shape: f32[2,8], index: 1, kind: output, shape index: {0}]   ;;  %s1221_s2 = inlined_call_operand.vmem [shape: s32[2,8], index: 2, kind: output, shape index: {1}]  }
   0x1   :  { %6 = vst [vmem:[#allocation11] sm:$0xff] %v1094_v0  ;;  %7 = vst [vmem:[#allocation13] sm:$0xff] %v1095_v1 }
   0x2   :  { %v1055_v2 = vld [vmem:[%s1219_s0 + $0x8] sm:$0xf]  ;;  %v43_v3 = vlaneseq  ;;  %v26_v4 = vld [vmem:[%s1219_s0] sm:$0xff]  ;;  %v1096_v5 = vmov 2147483648   ;;  %v1097_v6 = vmov 2147483647  }
   0x3   :  { %39 = vst [vmem:[#allocation15 + $0x8] sm:$0xf] %v1055_v2  ;;  %84 = vst [vmem:[#allocation12] sm:$0xff] %v1096_v5  ;;  %v54_v10 = vsub.s32 2147483647, %v26_v4  ;;  %vm53_vm0 = vcmp.lt.s32.totalorder %v26_v4, 0 }
   0x4   :  { %85 = vst [vmem:[#allocation14] sm:$0xff] %v1097_v6  ;;  %v1125_v7 = vshrl.u32 %v43_v3, 7  ;;  %v44_v8 = vand.u32 127, %v43_v3  ;;  %s1129_s0 = smov 0  }
   0x5   :  { %v55_v13 = vsel %vm53_vm0, %v54_v10, %v26_v4 }
   0x6   :  { %v47_v9 = vshrl.u32 %v1125_v7, 1 }
   0x8   :  { %v49_v11 = vmul.u32 128, %v47_v9 }
   0xa   :  { %v50_v12 = vadd.s32 %v49_v11, %v44_v8  ;;  %v61_v14 = vld [vmem:[#allocation15 + $0x8] sm:$0xff] }
   0xb   :  { %vm62_vm1 = vcmp.lt.s32.totalorder %v61_v14, 0  ;;  %v63_v15 = vsub.s32 2147483647, %v61_v14 }
   0xc   :  { %vm57_vm2 = vcmp.lt.s32.totalorder %v50_v12, 768  ;;  %v65_v16 = vadd.s32 512, %v50_v12  ;;  %79 = vst [vmem:[#allocation16] sm:$0xff] %v50_v12 }
   0xd   :  { %v58_v17 = vsel %vm57_vm2, %v55_v13, 2147483648  ;;  %v64_v18 = vsel %vm62_vm1, %v63_v15, %v61_v14 }
   0xe   :  { %59 = vst [vmem:[#allocation15] sm:$0xff] %v58_v17  ;;  %vm66_vm3 = vcmp.lt.s32.totalorder %v65_v16, 768  ;;  %82 = vst [vmem:[#allocation16 + $0x8] sm:$0xff] %v65_v16 }
   0xf   :  { %v67_v19 = vsel %vm66_vm3, %v64_v18, 2147483648 }
  0x10   :  { %68 = vst [vmem:[#allocation15 + $0x8] sm:$0xff] %v67_v19 }
  0x11 LB: > { %s419_s13 = scalar_lea.vmem [#allocation12], %s1092_s0  ;;  %s421_s14 = scalar_lea.vmem [#allocation14], %s1092_s0  ;;  %s1092_s0 = sphi %s1129_s0, %s92_s0  }
  0x12   : > { %s92_s0 = sadd.s32 1, %s1092_s0  }
  0x13   : > { %v94_v21 = vld [vmem:[#allocation16] sm:$0xff]  ;;  %p89_p2 = scmp.ge.s32.totalorder %s92_s0, 8  }
  0x15   : > { %v93_v20 = vld [vmem:[#allocation15] sm:$0xff]  ;;  %v99_v23 = vld [vmem:[#allocation16 + $0x8] sm:$0xff] }
  0x16   : > { %vm103_vm6 = vcmp.lt.s32.totalorder %v99_v23, %v94_v21 }
  0x17   : > { %v97_v22 = vld [vmem:[#allocation15 + $0x8] sm:$0xff] }
  0x18   : > { %vm101_vm4 = vcmp.gt.s32.totalorder %v97_v22, %v93_v20  ;;  %vm102_vm5 = vcmp.eq.s32.totalorder %v97_v22, %v93_v20 }
  0x19   : > { %vm104_vm7 = vmand %vm102_vm5, %vm103_vm6 }
  0x1a   : > { %vm105_vm8 = vmor %vm101_vm4, %vm104_vm7 }
  0x1b   : > { %v106_v24 = vsel %vm105_vm8, %v97_v22, %v93_v20  ;;  %v107_v25 = vsel %vm105_vm8, %v99_v23, %v94_v21 }
  0x1c   : > { %v109_v26 = vrot.slane %v106_v24, 2  ;;  %v110_v27 = vrot.slane %v107_v25, 2 }
  0x1e   : > { %vm112_vm9 = vcmp.gt.s32.totalorder %v109_v26, %v106_v24  ;;  %vm113_vm10 = vcmp.eq.s32.totalorder %v109_v26, %v106_v24  ;;  %vm114_vm11 = vcmp.lt.s32.totalorder %v110_v27, %v107_v25 }
  0x1f   : > { %vm115_vm12 = vmand %vm113_vm10, %vm114_vm11 }
  0x20   : > { %vm116_vm13 = vmor %vm112_vm9, %vm115_vm12 }
  0x21   : > { %v117_v28 = vsel %vm116_vm13, %v109_v26, %v106_v24  ;;  %v118_v29 = vsel %vm116_vm13, %v110_v27, %v107_v25 }
  0x22   : > { %v120_v30 = vrot.slane %v117_v28, 2  ;;  %v121_v31 = vrot.slane %v118_v29, 2 }
  0x24   : > { %vm123_vm14 = vcmp.gt.s32.totalorder %v120_v30, %v117_v28  ;;  %vm124_vm15 = vcmp.eq.s32.totalorder %v120_v30, %v117_v28  ;;  %vm125_vm0 = vcmp.lt.s32.totalorder %v121_v31, %v118_v29 }
  0x25   : > { %vm126_vm1 = vmand %vm124_vm15, %vm125_vm0 }
  0x26   : > { %vm127_vm2 = vmor %vm123_vm14, %vm126_vm1 }
  0x27   : > { %v128_v32 = vsel %vm127_vm2, %v120_v30, %v117_v28  ;;  %v129_v33 = vsel %vm127_vm2, %v121_v31, %v118_v29 }
  0x28   : > { %v131_v34 = vrot.slane %v128_v32, 2  ;;  %v132_v35 = vrot.slane %v129_v33, 2 }
  0x2a   : > { %vm134_vm3 = vcmp.gt.s32.totalorder %v131_v34, %v128_v32  ;;  %vm135_vm4 = vcmp.eq.s32.totalorder %v131_v34, %v128_v32  ;;  %vm136_vm5 = vcmp.lt.s32.totalorder %v132_v35, %v129_v33 }
  0x2b   : > { %vm137_vm6 = vmand %vm135_vm4, %vm136_vm5 }
  0x2c   : > { %vm138_vm7 = vmor %vm134_vm3, %vm137_vm6 }
  0x2d   : > { %v140_v36 = vsel %vm138_vm7, %v132_v35, %v129_v33  ;;  %v139_v37 = vsel %vm138_vm7, %v131_v34, %v128_v32 }
  0x2e   : > { %174 = vxpose.xlu1.b32.start [1/16] %v140_v36, 128  ;;  %142 = vxpose.xlu0.b32.start [1/16] %v139_v37, 128 }
  0x32   : > { %175 = vxpose.xlu1.b32.cont [2/16] %v140_v36, 128  ;;  %143 = vxpose.xlu0.b32.cont [2/16] %v139_v37, 128 }
  0x36   : > { %176 = vxpose.xlu1.b32.cont [3/16] %v140_v36, 128  ;;  %144 = vxpose.xlu0.b32.cont [3/16] %v139_v37, 128 }
  0x3a   : > { %177 = vxpose.xlu1.b32.cont [4/16] %v140_v36, 128  ;;  %145 = vxpose.xlu0.b32.cont [4/16] %v139_v37, 128 }
  0x3e   : > { %178 = vxpose.xlu1.b32.cont [5/16] %v140_v36, 128  ;;  %146 = vxpose.xlu0.b32.cont [5/16] %v139_v37, 128 }
  0x42   : > { %179 = vxpose.xlu1.b32.cont [6/16] %v140_v36, 128  ;;  %147 = vxpose.xlu0.b32.cont [6/16] %v139_v37, 128 }
  0x46   : > { %180 = vxpose.xlu1.b32.cont [7/16] %v140_v36, 128  ;;  %148 = vxpose.xlu0.b32.cont [7/16] %v139_v37, 128 }
  0x4a   : > { %181 = vxpose.xlu1.b32.cont [8/16] %v140_v36, 128  ;;  %149 = vxpose.xlu0.b32.cont [8/16] %v139_v37, 128 }
  0x4e   : > { %182 = vxpose.xlu1.b32.cont [9/16] %v140_v36, 128  ;;  %150 = vxpose.xlu0.b32.cont [9/16] %v139_v37, 128 }
  0x52   : > { %183 = vxpose.xlu1.b32.cont [10/16] %v140_v36, 128  ;;  %151 = vxpose.xlu0.b32.cont [10/16] %v139_v37, 128 }
  0x56   : > { %184 = vxpose.xlu1.b32.cont [11/16] %v140_v36, 128  ;;  %152 = vxpose.xlu0.b32.cont [11/16] %v139_v37, 128 }
  0x5a   : > { %185 = vxpose.xlu1.b32.cont [12/16] %v140_v36, 128  ;;  %153 = vxpose.xlu0.b32.cont [12/16] %v139_v37, 128 }
  0x5e   : > { %186 = vxpose.xlu1.b32.cont [13/16] %v140_v36, 128  ;;  %154 = vxpose.xlu0.b32.cont [13/16] %v139_v37, 128 }
  0x62   : > { %187 = vxpose.xlu1.b32.cont [14/16] %v140_v36, 128  ;;  %155 = vxpose.xlu0.b32.cont [14/16] %v139_v37, 128 }
  0x66   : > { %188 = vxpose.xlu1.b32.cont [15/16] %v140_v36, 128  ;;  %156 = vxpose.xlu0.b32.cont [15/16] %v139_v37, 128 }
  0x6a   : > { %189 = vxpose.xlu1.b32.end [16/16] %v140_v36, 128  ;;  %157 = vxpose.xlu0.b32.end [16/16] %v139_v37, 128 }
  0xaa   : > { %v190_v38 = vpop.trf.xlu1  ;;  %v158_v39 = vpop.trf.xlu0 }
  0xae   : > { %v191_v40 = vpop.trf.xlu1  ;;  %v159_v41 = vpop.trf.xlu0 }
  0xaf   : > { %vm210_vm8 = vcmp.lt.s32.totalorder %v191_v40, %v190_v38  ;;  %vm208_vm9 = vcmp.gt.s32.totalorder %v159_v41, %v158_v39  ;;  %vm209_vm10 = vcmp.eq.s32.totalorder %v159_v41, %v158_v39 }
  0xb0   : > { %vm211_vm11 = vmand %vm209_vm10, %vm210_vm8 }
  0xb1   : > { %vm212_vm12 = vmor %vm208_vm9, %vm211_vm11 }
  0xb2   : > { %v213_v42 = vsel %vm212_vm12, %v159_v41, %v158_v39  ;;  %v192_v43 = vpop.trf.xlu1  ;;  %v214_v44 = vsel %vm212_vm12, %v191_v40, %v190_v38  ;;  %v160_v45 = vpop.trf.xlu0 }
  0xb3   : > { %vm219_vm13 = vcmp.lt.s32.totalorder %v192_v43, %v214_v44  ;;  %vm217_vm14 = vcmp.gt.s32.totalorder %v160_v45, %v213_v42  ;;  %vm218_vm15 = vcmp.eq.s32.totalorder %v160_v45, %v213_v42 }
  0xb4   : > { %vm220_vm0 = vmand %vm218_vm15, %vm219_vm13 }
  0xb5   : > { %vm221_vm1 = vmor %vm217_vm14, %vm220_vm0 }
  0xb6   : > { %v222_v46 = vsel %vm221_vm1, %v160_v45, %v213_v42  ;;  %v193_v47 = vpop.trf.xlu1  ;;  %v223_v48 = vsel %vm221_vm1, %v192_v43, %v214_v44  ;;  %v161_v49 = vpop.trf.xlu0 }
  0xb7   : > { %vm228_vm2 = vcmp.lt.s32.totalorder %v193_v47, %v223_v48  ;;  %vm226_vm3 = vcmp.gt.s32.totalorder %v161_v49, %v222_v46  ;;  %vm227_vm4 = vcmp.eq.s32.totalorder %v161_v49, %v222_v46 }
  0xb8   : > { %vm229_vm5 = vmand %vm227_vm4, %vm228_vm2 }
  0xb9   : > { %vm230_vm6 = vmor %vm226_vm3, %vm229_vm5 }
  0xba   : > { %v231_v50 = vsel %vm230_vm6, %v161_v49, %v222_v46  ;;  %v194_v51 = vpop.trf.xlu1  ;;  %v232_v52 = vsel %vm230_vm6, %v193_v47, %v223_v48  ;;  %v162_v53 = vpop.trf.xlu0 }
  0xbb   : > { %vm237_vm7 = vcmp.lt.s32.totalorder %v194_v51, %v232_v52  ;;  %vm235_vm8 = vcmp.gt.s32.totalorder %v162_v53, %v231_v50  ;;  %vm236_vm9 = vcmp.eq.s32.totalorder %v162_v53, %v231_v50 }
  0xbc   : > { %vm238_vm10 = vmand %vm236_vm9, %vm237_vm7 }
  0xbd   : > { %vm239_vm11 = vmor %vm235_vm8, %vm238_vm10 }
  0xbe   : > { %v240_v54 = vsel %vm239_vm11, %v162_v53, %v231_v50  ;;  %v195_v55 = vpop.trf.xlu1  ;;  %v241_v56 = vsel %vm239_vm11, %v194_v51, %v232_v52  ;;  %v163_v57 = vpop.trf.xlu0 }
  0xbf   : > { %vm246_vm12 = vcmp.lt.s32.totalorder %v195_v55, %v241_v56  ;;  %vm244_vm13 = vcmp.gt.s32.totalorder %v163_v57, %v240_v54  ;;  %vm245_vm14 = vcmp.eq.s32.totalorder %v163_v57, %v240_v54 }
  0xc0   : > { %vm247_vm15 = vmand %vm245_vm14, %vm246_vm12 }
  0xc1   : > { %vm248_vm0 = vmor %vm244_vm13, %vm247_vm15 }
  0xc2   : > { %v249_v58 = vsel %vm248_vm0, %v163_v57, %v240_v54  ;;  %v196_v59 = vpop.trf.xlu1  ;;  %v250_v60 = vsel %vm248_vm0, %v195_v55, %v241_v56  ;;  %v164_v61 = vpop.trf.xlu0 }
  0xc3   : > { %vm255_vm1 = vcmp.lt.s32.totalorder %v196_v59, %v250_v60  ;;  %vm253_vm2 = vcmp.gt.s32.totalorder %v164_v61, %v249_v58  ;;  %vm254_vm3 = vcmp.eq.s32.totalorder %v164_v61, %v249_v58 }
  0xc4   : > { %vm256_vm4 = vmand %vm254_vm3, %vm255_vm1 }
  0xc5   : > { %vm257_vm5 = vmor %vm253_vm2, %vm256_vm4 }
  0xc6   : > { %v258_v62 = vsel %vm257_vm5, %v164_v61, %v249_v58  ;;  %v197_v63 = vpop.trf.xlu1  ;;  %v259_v0 = vsel %vm257_vm5, %v196_v59, %v250_v60  ;;  %v165_v1 = vpop.trf.xlu0 }
  0xc7   : > { %vm264_vm6 = vcmp.lt.s32.totalorder %v197_v63, %v259_v0  ;;  %vm262_vm7 = vcmp.gt.s32.totalorder %v165_v1, %v258_v62  ;;  %vm263_vm8 = vcmp.eq.s32.totalorder %v165_v1, %v258_v62 }
  0xc8   : > { %vm265_vm9 = vmand %vm263_vm8, %vm264_vm6 }
  0xc9   : > { %vm266_vm10 = vmor %vm262_vm7, %vm265_vm9 }
  0xca   : > { %v267_v2 = vsel %vm266_vm10, %v165_v1, %v258_v62  ;;  %v198_v4 = vpop.trf.xlu1  ;;  %v268_v5 = vsel %vm266_vm10, %v197_v63, %v259_v0  ;;  %v166_v6 = vpop.trf.xlu0 }
  0xcb   : > { %vm273_vm11 = vcmp.lt.s32.totalorder %v198_v4, %v268_v5  ;;  %vm271_vm12 = vcmp.gt.s32.totalorder %v166_v6, %v267_v2  ;;  %vm272_vm13 = vcmp.eq.s32.totalorder %v166_v6, %v267_v2 }
  0xcc   : > { %vm274_vm14 = vmand %vm272_vm13, %vm273_vm11 }
  0xcd   : > { %vm275_vm15 = vmor %vm271_vm12, %vm274_vm14 }
  0xce   : > { %v276_v8 = vsel %vm275_vm15, %v166_v6, %v267_v2  ;;  %v199_v9 = vpop.trf.xlu1  ;;  %v277_v10 = vsel %vm275_vm15, %v198_v4, %v268_v5  ;;  %v167_v11 = vpop.trf.xlu0  ;;  %v1098_v6 = vmov 2147483648  }
  0xcf   : > { %vm282_vm0 = vcmp.lt.s32.totalorder %v199_v9, %v277_v10  ;;  %vm280_vm1 = vcmp.gt.s32.totalorder %v167_v11, %v276_v8  ;;  %vm281_vm2 = vcmp.eq.s32.totalorder %v167_v11, %v276_v8 }
  0xd0   : > { %vm283_vm3 = vmand %vm281_vm2, %vm282_vm0 }
  0xd1   : > { %vm284_vm4 = vmor %vm280_vm1, %vm283_vm3 }
  0xd2   : > { %v285_v12 = vsel %vm284_vm4, %v167_v11, %v276_v8  ;;  %v200_v13 = vpop.trf.xlu1  ;;  %v286_v14 = vsel %vm284_vm4, %v199_v9, %v277_v10  ;;  %v168_v15 = vpop.trf.xlu0  ;;  %v1099_v8 = vmov 2147483647  }
  0xd3   : > { %vm291_vm5 = vcmp.lt.s32.totalorder %v200_v13, %v286_v14  ;;  %vm289_vm6 = vcmp.gt.s32.totalorder %v168_v15, %v285_v12  ;;  %vm290_vm7 = vcmp.eq.s32.totalorder %v168_v15, %v285_v12 }
  0xd4   : > { %vm292_vm8 = vmand %vm290_vm7, %vm291_vm5 }
  0xd5   : > { %vm293_vm9 = vmor %vm289_vm6, %vm292_vm8 }
  0xd6   : > { %v294_v16 = vsel %vm293_vm9, %v168_v15, %v285_v12  ;;  %v201_v17 = vpop.trf.xlu1  ;;  %v295_v18 = vsel %vm293_vm9, %v200_v13, %v286_v14  ;;  %v169_v19 = vpop.trf.xlu0  ;;  %v517_v13 = vld [vmem:[#allocation11] sm:$0xff] (%p89_p2)  ;;  %v518_v14 = vld [vmem:[#allocation13] sm:$0xff] (%p89_p2)  ;;  %v1100_v15 = vmov (%p89_p2), 839939668  }
  0xd7   : > { %vm300_vm10 = vcmp.lt.s32.totalorder %v201_v17, %v295_v18  ;;  %vm298_vm11 = vcmp.gt.s32.totalorder %v169_v19, %v294_v16  ;;  %vm299_vm12 = vcmp.eq.s32.totalorder %v169_v19, %v294_v16 }
  0xd8   : > { %vm301_vm13 = vmand %vm299_vm12, %vm300_vm10 }
  0xd9   : > { %vm302_vm14 = vmor %vm298_vm11, %vm301_vm13 }
  0xda   : > { %v303_v20 = vsel %vm302_vm14, %v169_v19, %v294_v16  ;;  %v202_v21 = vpop.trf.xlu1  ;;  %v304_v22 = vsel %vm302_vm14, %v201_v17, %v295_v18  ;;  %v170_v23 = vpop.trf.xlu0  ;;  %v542_v16 = vunpack.c.l.s4 (%p89_p2), %v1100_v15  ;;  %v1101_v17 = vmov (%p89_p2), 1417023538  }
  0xdb   : > { %vm309_vm15 = vcmp.lt.s32.totalorder %v202_v21, %v304_v22  ;;  %vm307_vm0 = vcmp.gt.s32.totalorder %v170_v23, %v303_v20  ;;  %vm308_vm1 = vcmp.eq.s32.totalorder %v170_v23, %v303_v20  ;;  %v570_v18 = vunpack.c.l.s4 (%p89_p2), %v1101_v17 }
  0xdc   : > { %vm310_vm2 = vmand %vm308_vm1, %vm309_vm15  ;;  %v543_v19 = vunpack.c.0.s8 (%p89_p2), %v542_v16 }
  0xdd   : > { %vm311_vm3 = vmor %vm307_vm0, %vm310_vm2 }
  0xde   : > { %v312_v24 = vsel %vm311_vm3, %v170_v23, %v303_v20  ;;  %v203_v25 = vpop.trf.xlu1  ;;  %v313_v26 = vsel %vm311_vm3, %v202_v21, %v304_v22  ;;  %v171_v27 = vpop.trf.xlu0  ;;  %v563_v23 = vand.u32 (%p89_p2), 4, %v1125_v7 }
  0xdf   : > { %vm318_vm4 = vcmp.lt.s32.totalorder %v203_v25, %v313_v26  ;;  %vm316_vm5 = vcmp.gt.s32.totalorder %v171_v27, %v312_v24  ;;  %vm317_vm6 = vcmp.eq.s32.totalorder %v171_v27, %v312_v24 }
  0xe0   : > { %vm319_vm7 = vmand %vm317_vm6, %vm318_vm4 }
  0xe1   : > { %vm320_vm8 = vmor %vm316_vm5, %vm319_vm7 }
  0xe2   : > { %v321_v28 = vsel %vm320_vm8, %v171_v27, %v312_v24  ;;  %v204_v29 = vpop.trf.xlu1  ;;  %v322_v30 = vsel %vm320_vm8, %v203_v25, %v313_v26  ;;  %v172_v31 = vpop.trf.xlu0  ;;  %v571_v25 = vunpack.c.0.s8 (%p89_p2), %v570_v18 }
  0xe3   : > { %vm327_vm9 = vcmp.lt.s32.totalorder %v204_v29, %v322_v30  ;;  %vm325_vm10 = vcmp.gt.s32.totalorder %v172_v31, %v321_v28  ;;  %vm326_vm11 = vcmp.eq.s32.totalorder %v172_v31, %v321_v28 }
  0xe4   : > { %vm328_vm12 = vmand %vm326_vm11, %vm327_vm9 }
  0xe5   : > { %vm329_vm13 = vmor %vm325_vm10, %vm328_vm12 }
  0xe6   : > { %v330_v32 = vsel %vm329_vm13, %v172_v31, %v321_v28  ;;  %v205_v33 = vpop.trf.xlu1  ;;  %v331_v34 = vsel %vm329_vm13, %v204_v29, %v322_v30  ;;  %v173_v35 = vpop.trf.xlu0  ;;  %v1102_v31 = vmov (%p89_p2), 1732584193  }
  0xe7   : > { %vm336_vm14 = vcmp.lt.s32.totalorder %v205_v33, %v331_v34  ;;  %vm334_vm15 = vcmp.gt.s32.totalorder %v173_v35, %v330_v32  ;;  %vm335_vm0 = vcmp.eq.s32.totalorder %v173_v35, %v330_v32 }
  0xe8   : > { %vm337_vm1 = vmand %vm335_vm0, %vm336_vm14 }
  0xe9   : > { %vm338_vm2 = vmor %vm334_vm15, %vm337_vm1 }
  0xea   : > { %v339_v36 = vsel %vm338_vm2, %v173_v35, %v330_v32  ;;  %v340_v37 = vsel %vm338_vm2, %v205_v33, %v331_v34  ;;  %v598_v32 = vunpack.c.l.s4 (%p89_p2), %v1102_v31  ;;  %v1154_v33 = vsub.s32 (%p89_p2), %v571_v25, %v1125_v7 }
  0xeb   : > { %v342_v38 = vrot.slane %v339_v36, 1  ;;  %v343_v39 = vrot.slane %v340_v37, 1  ;;  %v591_v34 = vand.u32 (%p89_p2), 2, %v1125_v7 }
  0xed   : > { %vm345_vm3 = vcmp.gt.s32.totalorder %v342_v38, %v339_v36  ;;  %vm346_vm4 = vcmp.eq.s32.totalorder %v342_v38, %v339_v36  ;;  %vm347_vm5 = vcmp.lt.s32.totalorder %v343_v39, %v340_v37 }
  0xee   : > { %vm348_vm6 = vmand %vm346_vm4, %vm347_vm5 }
  0xef   : > { %vm349_vm7 = vmor %vm345_vm3, %vm348_vm6 }
  0xf0   : > { %v350_v40 = vsel %vm349_vm7, %v342_v38, %v339_v36  ;;  %v351_v41 = vsel %vm349_vm7, %v343_v39, %v340_v37  ;;  %v599_v37 = vunpack.c.0.s8 (%p89_p2), %v598_v32 }
  0xf1   : > { %v353_v42 = vrot.slane %v350_v40, 1  ;;  %v354_v43 = vrot.slane %v351_v41, 1 }
  0xf3   : > { %vm356_vm8 = vcmp.gt.s32.totalorder %v353_v42, %v350_v40  ;;  %vm357_vm9 = vcmp.eq.s32.totalorder %v353_v42, %v350_v40  ;;  %vm358_vm10 = vcmp.lt.s32.totalorder %v354_v43, %v351_v41 }
  0xf4   : > { %vm359_vm11 = vmand %vm357_vm9, %vm358_vm10 }
  0xf5   : > { %vm360_vm12 = vmor %vm356_vm8, %vm359_vm11 }
  0xf6   : > { %v361_v44 = vsel %vm360_vm12, %v353_v42, %v350_v40  ;;  %v362_v45 = vsel %vm360_vm12, %v354_v43, %v351_v41  ;;  %v1168_v42 = vsub.s32 (%p89_p2), %v599_v37, %v1125_v7 }
  0xf7   : > { %v364_v46 = vrot.slane %v361_v44, 1  ;;  %v365_v47 = vrot.slane %v362_v45, 1 }
  0xf9   : > { %vm369_vm13 = vcmp.lt.s32.totalorder %v365_v47, %v362_v45  ;;  %vm367_vm14 = vcmp.gt.s32.totalorder %v364_v46, %v361_v44  ;;  %vm368_vm15 = vcmp.eq.s32.totalorder %v364_v46, %v361_v44 }
  0xfa   : > { %vm370_vm0 = vmand %vm368_vm15, %vm369_vm13 }
  0xfb   : > { %vm371_vm1 = vmor %vm367_vm14, %vm370_vm0 }
  0xfc   : > { %v372_v48 = vsel %vm371_vm1, %v364_v46, %v361_v44  ;;  %v373_v49 = vsel %vm371_vm1, %v365_v47, %v362_v45  ;;  %v619_v46 = vand.u32 (%p89_p2), 1, %v1125_v7 }
  0xfd   : > { %v375_v50 = vrot.slane %v372_v48, 1  ;;  %v376_v51 = vrot.slane %v373_v49, 1 }
  0xff   : > { %vm378_vm2 = vcmp.gt.s32.totalorder %v375_v50, %v372_v48  ;;  %vm379_vm3 = vcmp.eq.s32.totalorder %v375_v50, %v372_v48  ;;  %vm380_vm4 = vcmp.lt.s32.totalorder %v376_v51, %v373_v49 }
 0x100   : > { %vm381_vm5 = vmand %vm379_vm3, %vm380_vm4 }
 0x101   : > { %vm382_vm6 = vmor %vm378_vm2, %vm381_vm5 }
 0x102   : > { %v383_v52 = vsel %vm382_vm6, %v375_v50, %v372_v48  ;;  %v384_v53 = vsel %vm382_vm6, %v376_v51, %v373_v49 }
 0x103   : > { %v386_v54 = vrot.slane %v383_v52, 1  ;;  %v387_v55 = vrot.slane %v384_v53, 1 }
 0x105   : > { %vm389_vm7 = vcmp.gt.s32.totalorder %v386_v54, %v383_v52  ;;  %vm390_vm8 = vcmp.eq.s32.totalorder %v386_v54, %v383_v52  ;;  %vm391_vm9 = vcmp.lt.s32.totalorder %v387_v55, %v384_v53 }
 0x106   : > { %vm392_vm10 = vmand %vm390_vm8, %vm391_vm9 }
 0x107   : > { %vm393_vm11 = vmor %vm389_vm7, %vm392_vm10 }
 0x108   : > { %v394_v56 = vsel %vm393_vm11, %v386_v54, %v383_v52  ;;  %v395_v57 = vsel %vm393_vm11, %v387_v55, %v384_v53 }
 0x109   : > { %v397_v58 = vrot.slane %v394_v56, 1  ;;  %v398_v59 = vrot.slane %v395_v57, 1 }
 0x10b   : > { %vm400_vm12 = vcmp.gt.s32.totalorder %v397_v58, %v394_v56  ;;  %vm401_vm13 = vcmp.eq.s32.totalorder %v397_v58, %v394_v56  ;;  %vm402_vm14 = vcmp.lt.s32.totalorder %v398_v59, %v395_v57 }
 0x10c   : > { %vm403_vm15 = vmand %vm401_vm13, %vm402_vm14  ;;  %vm1148_vm13 = vcmp.ne.s32.totalorder (%p89_p2), %v563_v23, 0 }
 0x10d   : > { %vm404_vm0 = vmor %vm400_vm12, %vm403_vm15 }
 0x10e   : > { %v405_v60 = vsel %vm404_vm0, %v397_v58, %v394_v56  ;;  %v406_v61 = vsel %vm404_vm0, %v398_v59, %v395_v57 }
 0x10f   : > { %v408_v62 = vrot.slane %v405_v60, 1  ;;  %v409_v63 = vrot.slane %v406_v61, 1 }
 0x111   : > { %vm411_vm1 = vcmp.gt.s32.totalorder %v408_v62, %v405_v60  ;;  %vm412_vm2 = vcmp.eq.s32.totalorder %v408_v62, %v405_v60  ;;  %vm413_vm3 = vcmp.lt.s32.totalorder %v409_v63, %v406_v61 }
 0x112   : > { %vm414_vm4 = vmand %vm412_vm2, %vm413_vm3 }
 0x113   : > { %vm415_vm5 = vmor %vm411_vm1, %vm414_vm4 }
 0x114   : > { %v417_v0 = vsel %vm415_vm5, %v409_v63, %v406_v61  ;;  %v416_v1 = vsel %vm415_vm5, %v408_v62, %v405_v60 }
 0x115   : > { %424 = vxpose.xlu0.b32.start.end [1/1] (short) (narrow) %v417_v0, 8  ;;  %420 = vst [vmem:[%s419_s13] sm:$0x1] %v416_v1  ;;  %422 = vst [vmem:[%s421_s14] sm:$0x1] %v417_v0 }
 0x11c   :  { %v505_v11 = vld [vmem:[#allocation12 + $0x7] ss:$-1 sm:$0xff] (%p89_p2)  ;;  %v511_v12 = vld [vmem:[#allocation14 + $0x7] ss:$-1 sm:$0xff] (%p89_p2) }
 0x11d   :  { %vm523_vm8 = vcmp.gt.s32.totalorder (%p89_p2), %v517_v13, %v505_v11  ;;  %vm524_vm9 = vcmp.eq.s32.totalorder (%p89_p2), %v517_v13, %v505_v11  ;;  %vm525_vm10 = vcmp.lt.s32.totalorder (%p89_p2), %v518_v14, %v511_v12 }
 0x11e   :  { %vm526_vm11 = vmand (%p89_p2), %vm524_vm9, %vm525_vm10  ;;  %vm1161_vm9 = vcmp.ne.s32.totalorder (%p89_p2), %v591_v34, 0 }
 0x11f   :  { %vm527_vm12 = vmor (%p89_p2), %vm523_vm8, %vm526_vm11 }
 0x120   :  { %v528_v20 = vsel (%p89_p2), %vm527_vm12, %v517_v13, %v505_v11  ;;  %v530_v21 = vsel (%p89_p2), %vm527_vm12, %v505_v11, %v517_v13  ;;  %v532_v22 = vsel (%p89_p2), %vm527_vm12, %v518_v14, %v511_v12  ;;  %v534_v24 = vsel (%p89_p2), %vm527_vm12, %v511_v12, %v518_v14 }
 0x191   : > { %v440_v2 = vpop.trf.xlu0 }
 0x192   : > { %v479_v4 = vrot.slane %v440_v2, 1  ;;  %1064 = vpush %v440_v2 }
 0x194   : > { %1066 = vpush %v479_v4 }
 0x1c3   : > { %s1065_s15 = spop %1064 }
 0x1c4   : > { %s457_s16 = sshrl.u32 %s1065_s15, 9  ;;  %s459_s17 = ssub.s32 0, %s1065_s15 }
 0x1c5   : > { %p458_p0 = scmp.lt.s32.totalorder %s1065_s15, 0  ;;  %s1056_s18 = smin.u32 %s1065_s15, %s459_s17 }
 0x1c6   : > { %s461_s19 = sand.u32 511, %s1056_s18   ;;  %s1058_s20 = sshll.u32 %s457_s16, 3 }
 0x1c7   : > { %s462_s21 = ssub.s32 0, %s461_s19  ;;  %s1067_s22 = spop %1066 }
 0x1c8   : > { %s1229_s21 = smov (!%p458_p0, %s462_s21), %s461_s19  ;;  %s483_s26 = ssub.s32 0, %s1067_s22 }
 0x1c9   : > { %s464_s23 = sshrl.u32 %s1229_s21, 7  ;;  %s466_s24 = sand.u32 127, %s1229_s21  }
 0x1ca   : > { %s1057_s25 = sshll.u32 %s464_s23, 8  ;;  %s1060_s28 = smin.u32 %s1067_s22, %s483_s26 }
 0x1cb   : > { %s467_s27 = sadd.s32 %s1057_s25, %s466_s24  ;;  %p482_p1 = scmp.lt.s32.totalorder %s1067_s22, 0 }
 0x1cc   : > { %v469_v5 = vstv %s467_s27  ;;  %s485_s29 = sand.u32 511, %s1060_s28   ;;  %s473_s3 = scalar_lea.vmem [#allocation15], %s1058_s20 }
 0x1cd   : > { %vm471_vm6 = vcmp.eq.s32.totalorder %v43_v3, %v469_v5  ;;  %s486_s30 = ssub.s32 0, %s485_s29  ;;  %s476_s4 = scalar_lea.vmem [#allocation16], %s1058_s20 }
 0x1ce   : > { %474 = vst.msk [vmem:[%s473_s3] sm:$0xff] %vm471_vm6, %v1098_v6  ;;  %477 = vst.msk [vmem:[%s476_s4] sm:$0xff] %vm471_vm6, %v1099_v8  ;;  %s1231_s30 = smov (!%p482_p1, %s486_s30), %s485_s29  ;;  %s481_s5 = sshrl.u32 %s1067_s22, 9 }
 0x1cf   : > { %s488_s6 = sshrl.u32 %s1231_s30, 7  ;;  %s490_s7 = sand.u32 127, %s1231_s30  }
 0x1d0   : > { %s1061_s8 = sshll.u32 %s488_s6, 8  ;;  %s1062_s10 = sshll.u32 %s481_s5, 3 }
 0x1d1   : > { %s491_s9 = sadd.s32 %s1061_s8, %s490_s7  ;;  %s497_s11 = scalar_lea.vmem [#allocation15], %s1062_s10 }
 0x1d2   : > { %v493_v9 = vstv %s491_s9  ;;  %s500_s12 = scalar_lea.vmem [#allocation16], %s1062_s10  ;;  %91 = sbr.rel (!%p89_p2) target bundleno = 17 (0x11), region = 141 }
 0x1d3   : > { %v494_v10 = vadd.s32 128, %v493_v9 }
 0x1d5   : > { %vm495_vm7 = vcmp.eq.s32.totalorder %v43_v3, %v494_v10  ;;  %v1143_v3 = vsub.s32 (%p89_p2), %v543_v19, %v1125_v7 }
 0x1d6   : > { %498 = vst.msk [vmem:[%s497_s11] sm:$0xff] %vm495_vm7, %v1098_v6  ;;  %501 = vst.msk [vmem:[%s500_s12] sm:$0xff] %vm495_vm7, %v1099_v8 }
 0x1d7   :  { %v547_v26 = vrot.slane %v528_v20, %v1143_v3  ;;  %v554_v27 = vrot.slane %v532_v22, %v1143_v3  ;;  %v728_v28 = vrot.slane %v530_v21, %v1143_v3  ;;  %v735_v30 = vrot.slane %v534_v24, %v1143_v3 }
 0x1d9   :  { %vm556_vm14 = vcmp.gt.s32.totalorder %v528_v20, %v547_v26  ;;  %vm557_vm15 = vcmp.eq.s32.totalorder %v528_v20, %v547_v26  ;;  %vm558_vm0 = vcmp.lt.s32.totalorder %v532_v22, %v554_v27  ;;  %vm738_vm2 = vcmp.eq.s32.totalorder %v530_v21, %v728_v28 }
 0x1da   :  { %vm559_vm1 = vmand %vm557_vm15, %vm558_vm0  ;;  %vm739_vm3 = vcmp.lt.s32.totalorder %v534_v24, %v735_v30  ;;  %vm737_vm5 = vcmp.gt.s32.totalorder %v530_v21, %v728_v28 }
 0x1db   :  { %vm560_vm4 = vmor %vm556_vm14, %vm559_vm1 }
 0x1dc   :  { %vm565_vm6 = vmxor %vm560_vm4, %vm1148_vm13 }
 0x1dd   :  { %v566_v35 = vsel %vm565_vm6, %v528_v20, %v547_v26  ;;  %v567_v36 = vsel %vm565_vm6, %v532_v22, %v554_v27  ;;  %vm740_vm7 = vmand %vm738_vm2, %vm739_vm3 }
 0x1de   :  { %v575_v38 = vrot.slane %v566_v35, %v1154_v33  ;;  %v582_v39 = vrot.slane %v567_v36, %v1154_v33  ;;  %vm741_vm8 = vmor %vm737_vm5, %vm740_vm7 }
 0x1df   :  { %vm746_vm10 = vmxor %vm741_vm8, %vm1148_vm13 }
 0x1e0   :  { %vm584_vm11 = vcmp.gt.s32.totalorder %v566_v35, %v575_v38  ;;  %vm585_vm12 = vcmp.eq.s32.totalorder %v566_v35, %v575_v38  ;;  %vm586_vm14 = vcmp.lt.s32.totalorder %v567_v36, %v582_v39  ;;  %v747_v41 = vsel %vm746_vm10, %v530_v21, %v728_v28 }
 0x1e1   :  { %vm587_vm15 = vmand %vm585_vm12, %vm586_vm14  ;;  %v748_v43 = vsel %vm746_vm10, %v534_v24, %v735_v30  ;;  %v756_v44 = vrot.slane %v747_v41, %v1154_v33 }
 0x1e2   :  { %vm588_vm0 = vmor %vm584_vm11, %vm587_vm15  ;;  %v763_v45 = vrot.slane %v748_v43, %v1154_v33  ;;  %vm1177_vm11 = vcmp.ne.s32.totalorder %v619_v46, 0 }
 0x1e3   :  { %vm593_vm1 = vmxor %vm588_vm0, %vm1161_vm9  ;;  %vm765_vm2 = vcmp.gt.s32.totalorder %v747_v41, %v756_v44  ;;  %vm766_vm3 = vcmp.eq.s32.totalorder %v747_v41, %v756_v44 }
 0x1e4   :  { %v594_v47 = vsel %vm593_vm1, %v566_v35, %v575_v38  ;;  %v595_v48 = vsel %vm593_vm1, %v567_v36, %v582_v39  ;;  %vm767_vm4 = vcmp.lt.s32.totalorder %v748_v43, %v763_v45 }
 0x1e5   :  { %v603_v49 = vrot.slane %v594_v47, %v1168_v42  ;;  %v610_v50 = vrot.slane %v595_v48, %v1168_v42  ;;  %vm768_vm5 = vmand %vm766_vm3, %vm767_vm4 }
 0x1e6   :  { %vm769_vm6 = vmor %vm765_vm2, %vm768_vm5 }
 0x1e7   :  { %vm612_vm7 = vcmp.gt.s32.totalorder %v594_v47, %v603_v49  ;;  %vm613_vm8 = vcmp.eq.s32.totalorder %v594_v47, %v603_v49  ;;  %vm614_vm10 = vcmp.lt.s32.totalorder %v595_v48, %v610_v50  ;;  %vm774_vm12 = vmxor %vm769_vm6, %vm1161_vm9 }
 0x1e8   :  { %vm615_vm14 = vmand %vm613_vm8, %vm614_vm10  ;;  %v775_v7 = vsel %vm774_vm12, %v747_v41, %v756_v44  ;;  %v776_v52 = vsel %vm774_vm12, %v748_v43, %v763_v45 }
 0x1e9   :  { %vm616_vm15 = vmor %vm612_vm7, %vm615_vm14  ;;  %v784_v53 = vrot.slane %v775_v7, %v1168_v42  ;;  %v791_v54 = vrot.slane %v776_v52, %v1168_v42 }
 0x1ea   :  { %vm621_vm0 = vmxor %vm616_vm15, %vm1177_vm11 }
 0x1eb   :  { %v622_v55 = vsel %vm621_vm0, %v594_v47, %v603_v49  ;;  %v623_v56 = vsel %vm621_vm0, %v595_v48, %v610_v50  ;;  %vm793_vm1 = vcmp.gt.s32.totalorder %v775_v7, %v784_v53  ;;  %vm794_vm2 = vcmp.eq.s32.totalorder %v775_v7, %v784_v53 }
 0x1ec   :  { %v637_v57 = vrot.slane %v622_v55, %v1143_v3  ;;  %v644_v58 = vrot.slane %v623_v56, %v1143_v3  ;;  %vm795_vm3 = vcmp.lt.s32.totalorder %v776_v52, %v791_v54 }
 0x1ed   :  { %vm796_vm4 = vmand %vm794_vm2, %vm795_vm3 }
 0x1ee   :  { %vm646_vm5 = vcmp.gt.s32.totalorder %v622_v55, %v637_v57  ;;  %vm647_vm6 = vcmp.eq.s32.totalorder %v622_v55, %v637_v57  ;;  %vm648_vm7 = vcmp.lt.s32.totalorder %v623_v56, %v644_v58  ;;  %vm797_vm8 = vmor %vm793_vm1, %vm796_vm4 }
 0x1ef   :  { %vm649_vm10 = vmand %vm647_vm6, %vm648_vm7 }
 0x1f0   :  { %vm650_vm12 = vmor %vm646_vm5, %vm649_vm10 }
 0x1f1   :  { %vm655_vm14 = vmxor %vm650_vm12, %vm1148_vm13 }
 0x1f2   :  { %v656_v59 = vsel %vm655_vm14, %v622_v55, %v637_v57  ;;  %v657_v60 = vsel %vm655_vm14, %v623_v56, %v644_v58  ;;  %vm802_vm15 = vmxor %vm797_vm8, %vm1177_vm11 }
 0x1f3   :  { %v665_v61 = vrot.slane %v656_v59, %v1154_v33  ;;  %v672_v62 = vrot.slane %v657_v60, %v1154_v33  ;;  %v803_v63 = vsel %vm802_vm15, %v775_v7, %v784_v53  ;;  %v804_v0 = vsel %vm802_vm15, %v776_v52, %v791_v54 }
 0x1f4   :  { %v818_v1 = vrot.slane %v803_v63, %v1143_v3  ;;  %v825_v2 = vrot.slane %v804_v0, %v1143_v3 }
 0x1f5   :  { %vm674_vm0 = vcmp.gt.s32.totalorder %v656_v59, %v665_v61  ;;  %vm675_vm1 = vcmp.eq.s32.totalorder %v656_v59, %v665_v61  ;;  %vm676_vm2 = vcmp.lt.s32.totalorder %v657_v60, %v672_v62 }
 0x1f6   :  { %vm677_vm3 = vmand %vm675_vm1, %vm676_vm2  ;;  %vm828_vm4 = vcmp.eq.s32.totalorder %v803_v63, %v818_v1  ;;  %vm829_vm5 = vcmp.lt.s32.totalorder %v804_v0, %v825_v2  ;;  %vm827_vm7 = vcmp.gt.s32.totalorder %v803_v63, %v818_v1 }
 0x1f7   :  { %vm678_vm6 = vmor %vm674_vm0, %vm677_vm3 }
 0x1f8   :  { %vm683_vm8 = vmxor %vm678_vm6, %vm1161_vm9 }
 0x1f9   :  { %v684_v4 = vsel %vm683_vm8, %v656_v59, %v665_v61  ;;  %v685_v5 = vsel %vm683_vm8, %v657_v60, %v672_v62  ;;  %vm830_vm10 = vmand %vm828_vm4, %vm829_vm5 }
 0x1fa   :  { %v693_v6 = vrot.slane %v684_v4, %v1168_v42  ;;  %v700_v8 = vrot.slane %v685_v5, %v1168_v42  ;;  %vm831_vm12 = vmor %vm827_vm7, %vm830_vm10 }
 0x1fb   :  { %vm836_vm14 = vmxor %vm831_vm12, %vm1148_vm13 }
 0x1fc   :  { %vm702_vm15 = vcmp.gt.s32.totalorder %v684_v4, %v693_v6  ;;  %vm703_vm1 = vcmp.eq.s32.totalorder %v684_v4, %v693_v6  ;;  %vm704_vm2 = vcmp.lt.s32.totalorder %v685_v5, %v700_v8  ;;  %v837_v9 = vsel %vm836_vm14, %v803_v63, %v818_v1 }
 0x1fd   :  { %vm705_vm0 = vmand %vm703_vm1, %vm704_vm2  ;;  %v838_v10 = vsel %vm836_vm14, %v804_v0, %v825_v2  ;;  %v846_v11 = vrot.slane %v837_v9, %v1154_v33 }
 0x1fe   :  { %vm706_vm3 = vmor %vm702_vm15, %vm705_vm0  ;;  %v853_v12 = vrot.slane %v838_v10, %v1154_v33 }
 0x1ff   :  { %vm711_vm4 = vmxor %vm706_vm3, %vm1177_vm11  ;;  %vm855_vm5 = vcmp.gt.s32.totalorder %v837_v9, %v846_v11  ;;  %vm856_vm6 = vcmp.eq.s32.totalorder %v837_v9, %v846_v11 }
 0x200   :  { %v712_v13 = vsel %vm711_vm4, %v684_v4, %v693_v6  ;;  %v713_v14 = vsel %vm711_vm4, %v685_v5, %v700_v8  ;;  %vm857_vm7 = vcmp.lt.s32.totalorder %v838_v10, %v853_v12 }
 0x201   :  { %715 = vst [vmem:[#allocation11] sm:$0xff] %v712_v13  ;;  %716 = vst [vmem:[#allocation13] sm:$0xff] %v713_v14 }
 0x202   :  { %vm858_vm13 = vmand %vm856_vm6, %vm857_vm7 }
 0x203   :  { %vm859_vm8 = vmor %vm855_vm5, %vm858_vm13 }
 0x204   :  { %vm864_vm10 = vmxor %vm859_vm8, %vm1161_vm9 }
 0x205   :  { %v865_v15 = vsel %vm864_vm10, %v837_v9, %v846_v11  ;;  %v866_v16 = vsel %vm864_vm10, %v838_v10, %v853_v12 }
 0x206   :  { %v874_v17 = vrot.slane %v865_v15, %v1168_v42  ;;  %v881_v18 = vrot.slane %v866_v16, %v1168_v42 }
 0x208   :  { %vm883_vm12 = vcmp.gt.s32.totalorder %v865_v15, %v874_v17  ;;  %vm884_vm14 = vcmp.eq.s32.totalorder %v865_v15, %v874_v17  ;;  %vm885_vm15 = vcmp.lt.s32.totalorder %v866_v16, %v881_v18  ;;  %v899_v21 = vld [vmem:[#allocation11] sm:$0xff]  ;;  %v923_v24 = vld [vmem:[#allocation13] sm:$0xff] }
 0x209   :  { %vm886_vm1 = vmand %vm884_vm14, %vm885_vm15  ;;  %vm900_vm9 = vcmp.lt.s32.totalorder %v899_v21, 0  ;;  %v901_v22 = vsub.s32 2147483647, %v899_v21 }
 0x20a   :  { %vm887_vm2 = vmor %vm883_vm12, %vm886_vm1 }
 0x20b   :  { %vm892_vm0 = vmxor %vm887_vm2, %vm1177_vm11  ;;  %v902_v23 = vsel %vm900_vm9, %v901_v22, %v899_v21 }
 0x20c   :  { %v893_v19 = vsel %vm892_vm0, %v865_v15, %v874_v17  ;;  %v894_v20 = vsel %vm892_vm0, %v866_v16, %v881_v18  ;;  %903 = vst [vmem:[#allocation11] sm:$0xff] %v902_v23  ;;  %905 = vxpose.xlu0.b32.start.end [1/1] (short) (narrow) %v902_v23, 8 }
 0x20d   :  { %896 = vst [vmem:[#allocation12] sm:$0xff] %v893_v19  ;;  %897 = vst [vmem:[#allocation14] sm:$0xff] %v894_v20 }
 0x210   :  { %924 = vxpose.xlu0.b32.start.end [1/1] (short) (narrow) %v923_v24, 8 }
 0x288   :  { %v906_v3 = vpop.trf.xlu0 }
 0x289   :  { %922 = vst [vmem:[#allocation7] sm:$0xff] %v906_v3 }
 0x28c   :  { %v925_v25 = vpop.trf.xlu0 }
 0x28d   :  { %941 = vst [vmem:[#allocation9] sm:$0xff] %v925_v25 }
 0x290   :  { %v946_v26 = vld [vmem:[#allocation7] sm:$0x3] }
 0x291   :  { %949 = vst [vmem:[#allocation8] sm:$0x3] %v946_v26 }
 0x294   :  { %v954_v27 = vld [vmem:[#allocation9] sm:$0x3] }
 0x295   :  { %957 = vst [vmem:[#allocation10] sm:$0x3] %v954_v27 }
 0x298   :  { %v974_v28 = vld [vmem:[#allocation8] sm:$0x3] }
 0x299   :  { %975 = vst [vmem:[%s1220_s1] sm:$0x3] %v974_v28 }
 0x29c   :  { %v1007_v29 = vld [vmem:[#allocation10] sm:$0x3] }
 0x29d   :  { %1008 = vst [vmem:[%s1221_s2] sm:$0x3] %v1007_v29 }

// kernel: _postprocess_pipeline.2
= control target key start
LH: loop header
LB: loop body
LE: loop exit
PB: predicated region body
PF: predicated region fallthrough
CT: control target
= control target key end

     0   :  { %s457_s6 = smov 0   ;;  %s623_s0 = inlined_call_operand.vmem [shape: f32[2,48,128], index: 0, kind: input, shape index: {}]   ;;  %s624_s1 = inlined_call_operand.vmem [shape: f32[2,48,128], index: 1, kind: output, shape index: {}]  }
   0x1 LB: > { %s417_s7 = sadd.s32 4294967295, %s443_s6   ;;  %p421_p0 = scmp.ge.s32.totalorder %s443_s6, 1  ;;  %s443_s6 = sphi %s457_s6, %s11_s6  }
   0x2   : > { %p87_p1 = scmp.lt.s32.totalorder %s443_s6, 3 }
   0x4   : > { %p88_p2 = pnand %p421_p0, %p87_p1 }
   0x5   : > { %p107_p3 = scmp.lt.s32.totalorder (!%p88_p2), %s417_s7, 1  ;;  %s445_s12 = smov (!%p88_p2), 1  }
   0x6   : > { %91 = sbr.rel (%p88_p2) target bundleno = 167 (0xa7), region = 24  ;;  %s446_s13 = smov (!%p88_p2), 127  }
   0xb   : > { %s638_s7 = smov (!%p107_p3, %s417_s7), 1  ;;  %v123_v6 = vlaneseq }
   0xc   : > { %s426_s8 = smul.u32 48, %s638_s7 }
   0xd   : > { %v124_v9 = vand.u32 127, %v123_v6  ;;  %v497_v10 = vshrl.u32 %v123_v6, 7 }
   0xe   : > { %s111_s11 = scalar_lea.vmem %s623_s0, %s426_s8  ;;  %s569_s16 = scalar_lea.vmem %s624_s1, %s426_s8 }
   0xf   : > { %v473_v0 = vld [vmem:[%s111_s11 + $0x10] sm:$0xff]  ;;  %v475_v1 = vld [vmem:[%s111_s11] sm:$0xff]  ;;  %v479_v2 = vld [vmem:[%s111_s11 + $0x18] sm:$0xff]  ;;  %vm204_vm0 = vcmp.eq.s32.totalorder %v124_v9, 0  ;;  %v127_v13 = vadd.s32 8, %v497_v10  ;;  %v128_v16 = vadd.s32 16, %v497_v10 }
  0x10   : > { %209 = vrot.lane.b32.xlu1 %v473_v0, %s445_s12  ;;  %205 = vrot.lane.b32.xlu0 %v475_v1, %s445_s12  ;;  %v481_v3 = vld [vmem:[%s111_s11 + $0x8] sm:$0xff]  ;;  %v487_v5 = vld [vmem:[%s111_s11 + $0x20] sm:$0xff]  ;;  %vm225_vm1 = vcmp.eq.s32.totalorder %v124_v9, 15  ;;  %v131_v20 = vadd.s32 40, %v497_v10  ;;  %v130_v21 = vadd.s32 32, %v497_v10  ;;  %vm270_vm2 = vcmp.lt.s32.totalorder %v497_v10, 1 }
  0x11   : > { %v485_v4 = vld [vmem:[%s111_s11 + $0x28] sm:$0xff]  ;;  %v143_v19 = vand.u32 15, %v127_v13  ;;  %v150_v27 = vand.u32 15, %v128_v16  ;;  %v129_v33 = vadd.s32 24, %v497_v10  ;;  %vm307_vm3 = vcmp.lt.s32.totalorder %v497_v10, 7 }
  0x12   : > { %v136_v34 = vand.u32 15, %v497_v10  ;;  %v171_v35 = vand.u32 15, %v131_v20  ;;  %v164_v36 = vand.u32 15, %v130_v21 }
  0x13   : > { %vm524_vm4 = vcmp.eq.s32.totalorder %v150_v27, 0  ;;  %vm528_vm5 = vcmp.eq.s32.totalorder %v143_v19, 15  ;;  %v157_v50 = vand.u32 15, %v129_v33 }
  0x14   : > { %211 = vrot.lane.b32.xlu1 %v479_v2, %s445_s12  ;;  %207 = vrot.lane.b32.xlu0 %v481_v3, %s445_s12  ;;  %vm537_vm6 = vcmp.eq.s32.totalorder %v136_v34, 0  ;;  %vm541_vm7 = vcmp.eq.s32.totalorder %v171_v35, 15  ;;  %vm546_vm8 = vcmp.eq.s32.totalorder %v164_v36, 0 }
  0x15   : > { %vm573_vm9 = vcmp.eq.s32.totalorder %v157_v50, 15 }
  0x18   : > { %215 = vrot.lane.b32.xlu1 %v485_v4, %s445_s12  ;;  %213 = vrot.lane.b32.xlu0 %v487_v5, %s445_s12 }
  0x1c   : > { %228 = vrot.lane.b32.xlu1 %v481_v3, %s446_s13  ;;  %226 = vrot.lane.b32.xlu0 %v475_v1, %s446_s13 }
  0x20   : > { %232 = vrot.lane.b32.xlu1 %v479_v2, %s446_s13  ;;  %230 = vrot.lane.b32.xlu0 %v473_v0, %s446_s13 }
  0x24   : > { %236 = vrot.lane.b32.xlu1 %v485_v4, %s446_s13  ;;  %234 = vrot.lane.b32.xlu0 %v487_v5, %s446_s13 }
  0x82   : > { %v210_v7 = vpop.permute.xlu1 %209  ;;  %v206_v8 = vpop.permute.xlu0 %205 }
  0x83   : > { %v219_v17 = vsel %vm204_vm0, -1e+30, %v206_v8  ;;  %v221_v22 = vsel %vm204_vm0, -1e+30, %v210_v7 }
  0x84   : > { %v246_v23 = vmax.f32 %v219_v17, %v475_v1  ;;  %v248_v37 = vmax.f32 %v221_v22, %v473_v0 }
  0x86   : > { %v212_v11 = vpop.permute.xlu1 %211  ;;  %v208_v12 = vpop.permute.xlu0 %207 }
  0x87   : > { %v220_v18 = vsel %vm204_vm0, -1e+30, %v208_v12  ;;  %v222_v28 = vsel %vm204_vm0, -1e+30, %v212_v11 }
  0x88   : > { %v247_v24 = vmax.f32 %v220_v18, %v481_v3  ;;  %v249_v38 = vmax.f32 %v222_v28, %v479_v2 }
  0x8a   : > { %v216_v14 = vpop.permute.xlu1 %215  ;;  %v214_v15 = vpop.permute.xlu0 %213 }
  0x8b   : > { %v224_v47 = vsel %vm204_vm0, -1e+30, %v216_v14  ;;  %v223_v51 = vsel %vm204_vm0, -1e+30, %v214_v15 }
  0x8c   : > { %v251_v61 = vmax.f32 %v224_v47, %v485_v4  ;;  %v250_v7 = vmax.f32 %v223_v51, %v487_v5 }
  0x8e   : > { %v229_v25 = vpop.permute.xlu1 %228  ;;  %v227_v26 = vpop.permute.xlu0 %226 }
  0x8f   : > { %v241_v29 = vsel %vm225_vm1, -1e+30, %v229_v25  ;;  %v240_v30 = vsel %vm225_vm1, -1e+30, %v227_v26 }
  0x90   : > { %v511_v31 = vmax.f32 %v247_v24, %v241_v29  ;;  %v514_v32 = vmax.f32 %v246_v23, %v240_v30 }
  0x92   : > { %v265_v39 = vrot.slane %v511_v31, 7  ;;  %v264_v40 = vrot.slane %v514_v32, 7  ;;  %v233_v41 = vpop.permute.xlu1 %232  ;;  %v231_v42 = vpop.permute.xlu0 %230  ;;  %v302_v55 = vrot.slane %v511_v31, 1  ;;  %v301_v9 = vrot.slane %v514_v32, 1 }
  0x93   : > { %v243_v43 = vsel %vm225_vm1, -1e+30, %v233_v41  ;;  %v242_v46 = vsel %vm225_vm1, -1e+30, %v231_v42 }
  0x94   : > { %v255_v48 = vmax.f32 %v249_v38, %v243_v43  ;;  %v254_v49 = vmax.f32 %v248_v37, %v242_v46  ;;  %v275_v52 = vsel %vm270_vm2, %v264_v40, %v265_v39 }
  0x95   : > { %v333_v8 = vmax.f32 %v275_v52, %v511_v31  ;;  %v312_v31 = vsel %vm307_vm3, %v301_v9, %v302_v55 }
  0x96   : > { %v266_v56 = vrot.slane %v254_v49, 7  ;;  %v303_v57 = vrot.slane %v254_v49, 1  ;;  %v237_v58 = vpop.permute.xlu1 %236  ;;  %v235_v60 = vpop.permute.xlu0 %234  ;;  %v304_v62 = vrot.slane %v255_v48, 1  ;;  %v267_v13 = vrot.slane %v255_v48, 7 }
  0x97   : > { %v245_v63 = vsel %vm225_vm1, -1e+30, %v237_v58  ;;  %v244_v6 = vsel %vm225_vm1, -1e+30, %v235_v60 }
  0x98   : > { %v274_v11 = vsel %vm270_vm2, %v265_v39, %v266_v56  ;;  %v311_v12 = vsel %vm307_vm3, %v302_v55, %v303_v57  ;;  %v257_v16 = vmax.f32 %v251_v61, %v245_v63  ;;  %v256_v19 = vmax.f32 %v250_v7, %v244_v6 }
  0x99   : > { %v291_v14 = vsel %vm524_vm4, -1e+30, %v274_v11  ;;  %v327_v15 = vsel %vm528_vm5, -1e+30, %v311_v12  ;;  %v310_v20 = vsel %vm307_vm3, %v303_v57, %v304_v62  ;;  %v273_v27 = vsel %vm270_vm2, %v266_v56, %v267_v13 }
  0x9a   : > { %v334_v17 = vmax.f32 %v291_v14, %v254_v49  ;;  %v339_v18 = vmax.f32 %v333_v8, %v327_v15  ;;  %v269_v21 = vrot.slane %v257_v16, 7  ;;  %v306_v22 = vrot.slane %v257_v16, 1 }
  0x9b   : > { %v268_v25 = vrot.slane %v256_v19, 7  ;;  %v305_v26 = vrot.slane %v256_v19, 1  ;;  %v335_v38 = vmax.f32 %v273_v27, %v255_v48 }
  0x9c   : > { %v340_v24 = vmax.f32 %v334_v17, %v310_v20  ;;  %vm345_vm10 = vcmp.eq.f32.partialorder %v339_v18, %v481_v3  ;;  %v276_v29 = vsel %vm270_vm2, %v269_v21, %v264_v40  ;;  %v313_v30 = vsel %vm307_vm3, %v306_v22, %v301_v9 }
  0x9d   : > { %v351_v28 = vsel %vm345_vm10, %v481_v3, 0.0  ;;  %v289_v33 = vsel %vm537_vm6, -1e+30, %v276_v29  ;;  %v271_v34 = vsel %vm270_vm2, %v268_v25, %v269_v21  ;;  %v331_v35 = vsel %vm541_vm7, -1e+30, %v313_v30 }
  0x9e   : > { %vm346_vm11 = vcmp.eq.f32.partialorder %v340_v24, %v473_v0  ;;  %357 = vst [vmem:[%s569_s16 + $0x8] sm:$0xff] %v351_v28  ;;  %v332_v36 = vmax.f32 %v289_v33, %v514_v32  ;;  %v272_v37 = vsel %vm270_vm2, %v267_v13, %v268_v25  ;;  %v309_v40 = vsel %vm307_vm3, %v304_v62, %v305_v26 }
  0x9f   : > { %v352_v3 = vsel %vm346_vm11, %v473_v0, 0.0  ;;  %v293_v39 = vsel %vm546_vm8, -1e+30, %v272_v37  ;;  %v337_v41 = vmax.f32 %v271_v34, %v257_v16  ;;  %v329_v0 = vsel %vm573_vm9, -1e+30, %v309_v40 }
  0xa0   : > { %358 = vst [vmem:[%s569_s16 + $0x10] sm:$0xff] %v352_v3  ;;  %v338_v42 = vmax.f32 %v332_v36, %v312_v31  ;;  %v336_v32 = vmax.f32 %v293_v39, %v256_v19  ;;  %v308_v43 = vsel %vm307_vm3, %v305_v26, %v306_v22  ;;  %v341_v44 = vmax.f32 %v335_v38, %v329_v0 }
  0xa1   : > { %v343_v45 = vmax.f32 %v337_v41, %v331_v35 }
  0xa2   : > { %vm344_vm12 = vcmp.eq.f32.partialorder %v338_v42, %v475_v1  ;;  %v342_v46 = vmax.f32 %v336_v32, %v308_v43  ;;  %vm347_vm13 = vcmp.eq.f32.partialorder %v341_v44, %v479_v2 }
  0xa3   : > { %v350_v47 = vsel %vm344_vm12, %v475_v1, 0.0  ;;  %vm349_vm14 = vcmp.eq.f32.partialorder %v343_v45, %v485_v4  ;;  %v353_v48 = vsel %vm347_vm13, %v479_v2, 0.0 }
  0xa4   : > { %356 = vst [vmem:[%s569_s16] sm:$0xff] %v350_v47  ;;  %vm348_vm15 = vcmp.eq.f32.partialorder %v342_v46, %v487_v5  ;;  %v355_v10 = vsel %vm349_vm14, %v485_v4, 0.0  ;;  %359 = vst [vmem:[%s569_s16 + $0x18] sm:$0xff] %v353_v48 }
  0xa5   : > { %v354_v49 = vsel %vm348_vm15, %v487_v5, 0.0  ;;  %361 = vst [vmem:[%s569_s16 + $0x28] sm:$0xff] %v355_v10 }
  0xa6   : > { %360 = vst [vmem:[%s569_s16 + $0x20] sm:$0xff] %v354_v49 }
  0xa7 PF: > { %s11_s6 = sadd.s32 1, %s443_s6  }
  0xa8   : > { %p8_p4 = scmp.ge.s32.totalorder %s11_s6, 4  }
  0xaa   :  { %10 = sbr.rel (!%p8_p4) target bundleno = 1 (0x1), region = 54 }

// kernel: _postprocess_pipeline.3
= control target key start
LH: loop header
LB: loop body
LE: loop exit
PB: predicated region body
PF: predicated region fallthrough
CT: control target
= control target key end

     0   :  { %8 = vsyncpa [#allocation3], 0  ;;  %s778_s0 = inlined_call_operand.vmem [shape: f32[2,19,128], index: 0, kind: input, shape index: {}]   ;;  %s779_s1 = inlined_call_operand.vmem [shape: f32[2,9], index: 1, kind: input, shape index: {}]   ;;  %s780_s2 = inlined_call_operand.vmem [shape: f32[2,9], index: 2, kind: input, shape index: {}]   ;;  %s781_s3 = inlined_call_operand.vmem [shape: f32[2,14,128], index: 3, kind: output, shape index: {}]  }
   0x1   :  { %9 = vsyncpa [#allocation5], 0  ;;  %s589_s12 = smov 0  }
   0x2 LB: > { %s595_s13 = sadd.s32 4294967295, %s565_s12   ;;  %p475_p0 = scmp.ge.s32.totalorder %s565_s12, 1  ;;  %s565_s12 = sphi %s589_s12, %s15_s12  }
   0x3   : > { %p114_p1 = scmp.lt.s32.totalorder %s565_s12, 3  ;;  %s127_s16 = sshll.u32 %s779_s1, 4  ;;  %s128_s16 = int_to_ptr.vmem [resolvable:$true] %s127_s16 }
   0x4   : > { %p782_p3 = scmp.eq.s32.totalorder %s595_s13, 0  ;;  %s138_s20 = sshll.u32 %s780_s2, 4  ;;  %s139_s20 = int_to_ptr.vmem [resolvable:$true] %s138_s20 }
   0x5   : > { %p602_p2 = pnand %p475_p0, %p114_p1  ;;  %s521_s22 = scalar_lea.vmem %s128_s16, 32 }
   0x6   : > { %p522_p6 = scmp.ne.s32.totalorder %s128_s16, %s521_s22  ;;  %p529_p10 = scmp.lt.s32.totalorder %s128_s16, %s128_s16 }
   0x7   : > { %s784_s17 = scalar_select %p602_p2, 1, 0 }
   0x8   : > { %p498_p4 = pneg %p602_p2  ;;  %p530_p11 = scmp.lt.s32.totalorder %s521_s22, %s521_s22 }
   0xa   : > { %p614_p5 = pnand %p782_p3, %p498_p4  ;;  %p531_p12 = por %p530_p11, %p529_p10 }
   0xc   : > { %p523_p7 = pneg %p614_p5 }
   0xe   : > { %p524_p8 = pnand %p523_p7, %p522_p6 }
  0x10   : > { %p525_p9 = pneg %p524_p8 }
  0x12   : > { %p532_p13 = pnand %p531_p12, %p525_p9 }
  0x14   : > { %535 = shalt.err (!%p532_p13)
}
  0x15   : > { %s567_s23 = smov [#allocation2]   ;;  %s536_s24 = scalar_lea.vmem %s139_s20, 32 }
  0x16   : > { %501 = dma.vmem_to_smem (!%p614_p5), %s128_s16, 32, %s567_s23, [#allocation3]  }
  0x17   : > { %p537_p0 = scmp.ne.s32.totalorder %s139_s20, %s536_s24  ;;  %p544_p3 = scmp.lt.s32.totalorder %s139_s20, %s139_s20 }
  0x18   : > { %p545_p2 = scmp.lt.s32.totalorder %s536_s24, %s536_s24 }
  0x19   : > { %p539_p1 = pnand %p537_p0, %p523_p7 }
  0x1a   : > { %p546_p6 = por %p545_p2, %p544_p3 }
  0x1b   : > { %p540_p4 = pneg %p539_p1 }
  0x1d   : > { %p547_p8 = pnand %p546_p6, %p540_p4 }
  0x1f   : > { %550 = shalt.err (!%p547_p8)
}
  0x20   : > { %s568_s25 = smov [#allocation4]   ;;  %p786_p9 = scmp.ne.s32.totalorder %s784_s17, 0 }
  0x21   : > { %504 = dma.vmem_to_smem (!%p614_p5), %s139_s20, 32, %s568_s25, [#allocation5]  }
  0x22   : > { %159 = sbr.rel (%p786_p9) target bundleno = 88 (0x58), region = 32  ;;  %p787_p10 = scmp.eq.s32.totalorder (!%p786_p9), %s595_s13, 0 }
  0x27   : > { %556 = dma.done.wait (%p787_p10), [#allocation3], 32   ;;  %p788_p11 = pmov %p787_p10 }
  0x28   : > { %p789_p7 = pmov %p787_p10 }
  0x29   : > { %558 = vsyncadd (%p788_p11), [#allocation3], 4294967264 }
  0x2a   : > { %560 = dma.done.wait (%p789_p7), [#allocation5], 32   ;;  %p790_p2 = pmov %p789_p7 }
  0x2c   : > { %562 = vsyncadd (%p790_p2), [#allocation5], 4294967264 }
  0x2d   : > { %169 = sfence }
  0x2e   : > { %p188_p3 = scmp.lt.s32.totalorder %s595_s13, 1  ;;  %s636_s26 = sshll.u32 %s595_s13, 7  ;;  %vm375_vm0 = vcmask 1040384   ;;  %vm377_vm1 = vcmask 1041408   ;;  %vm379_vm2 = vcmask 1042432   ;;  %vm381_vm3 = vcmask 1043456  }
  0x2f   : > { %s202_s27 = sld [smem:[#allocation2 + %s636_s26]]  ;;  %s203_s28 = sadd.s32 1, %s636_s26  ;;  %vm383_vm4 = vcmask 1044480   ;;  %vm385_vm5 = vcmask 1045504   ;;  %vm387_vm6 = vcmask 1046528  }
  0x30   : > { %s792_s13 = smov (!%p188_p3, %s595_s13), 1  ;;  %s204_s29 = sld [smem:[#allocation2 + %s203_s28]] }
  0x31   : > { %s205_s30 = sadd.s32 2, %s636_s26  ;;  %s489_s4 = smul.u32 24, %s792_s13 }
  0x32   : > { %s649_s5 = sld [smem:[#allocation2 + %s205_s30]]  ;;  %s207_s9 = sadd.s32 3, %s636_s26 }
  0x33   : > { %s192_s8 = scalar_lea.vmem %s778_s0, %s489_s4  ;;  %s208_s10 = sld [smem:[#allocation2 + %s207_s9]] }
  0x34   : > { %v198_v0 = vld [vmem:[%s192_s8] sm:$0xff]  ;;  %v655_v1 = vld [vmem:[%s192_s8 + $0x8] sm:$0xff]  ;;  %v657_v2 = vld [vmem:[%s192_s8 + $0x10] sm:$0x7]  ;;  %s209_s11 = sadd.s32 4, %s636_s26  ;;  %s211_s15 = sadd.s32 5, %s636_s26 }
  0x35   : > { %s210_s14 = sld [smem:[#allocation2 + %s209_s11]]  ;;  %v228_v3 = vmul.f32 16.32, %v198_v0  ;;  %v231_v4 = vrot.slane %v198_v0, 5  ;;  %v307_v5 = vrot.slane %v655_v1, 4  ;;  %s213_s17 = sadd.s32 6, %s636_s26  ;;  %v234_v6 = vstv %s202_s27 }
  0x36   : > { %s668_s16 = sld [smem:[#allocation2 + %s211_s15]]  ;;  %v236_v7 = vstv %s204_s29  ;;  %v294_v8 = vmul.f32 1.442695, %v198_v0  ;;  %v310_v9 = vmul.f32 0.5, %v655_v1  ;;  %s215_s19 = sadd.s32 7, %s636_s26  ;;  %v345_v11 = vrot.slane %v657_v2, 1 }
  0x37   : > { %s674_s18 = sld [smem:[#allocation2 + %s213_s17]]  ;;  %v233_v10 = vadd.f32 %v231_v4, %v655_v1  ;;  %s217_s21 = sadd.s32 8, %s636_s26  ;;  %v229_v12 = vadd.f32 28.01, %v228_v3 }
  0x38   : > { %s681_s20 = sld [smem:[#allocation2 + %s215_s19]]  ;;  %519 = vpow2.f32 %v294_v8  ;;  %v312_v13 = vrot.slane %v310_v9, 6  ;;  %v692_v17 = vstv %s649_s5  ;;  %v703_v22 = vsel %vm375_vm0, %v345_v11, 0.0 }
  0x39   : > { %s686_s22 = sld [smem:[#allocation2 + %s217_s21]]  ;;  %v235_v14 = vmul.f32 %v234_v6, %v233_v10  ;;  %v237_v15 = vmul.f32 %v236_v7, %v233_v10  ;;  %v309_v16 = vadd.f32 %v307_v5, %v233_v10  ;;  %v694_v18 = vstv %s208_s10 }
  0x3a   : > { %s689_s23 = sld [smem:[#allocation4 + %s636_s26]]  ;;  %v245_v23 = vmul.f32 %v694_v18, %v233_v10  ;;  %v265_v26 = vrot.slane %v229_v12, 4  ;;  %s488_s26 = sshll.u32 %s792_s13, 4 }
  0x3b   : > { %s698_s24 = sld [smem:[#allocation4 + %s203_s28]]  ;;  %v239_v19 = vrot.slane %v237_v15, 1  ;;  %v700_v20 = vstv %s210_s14  ;;  %v314_v21 = vsub.f32 %v309_v16, %v312_v13  ;;  %v315_v34 = vadd.f32 %v312_v13, %v309_v16  ;;  %s197_s8 = scalar_lea.vmem %s781_s3, %s488_s26 }
  0x3c   : > { %s707_s25 = sld [smem:[#allocation4 + %s205_s30]]  ;;  %v247_v24 = vmul.f32 %v700_v20, %v233_v10  ;;  %v712_v25 = vstv %s668_s16 }
  0x3d   : > { %s716_s27 = sld [smem:[#allocation4 + %s207_s9]]  ;;  %v241_v27 = vadd.f32 %v239_v19, %v235_v14  ;;  %v254_v28 = vstv %s674_s18  ;;  %v316_v29 = vmul.f32 %v314_v21, %v234_v6  ;;  %v317_v30 = vmul.f32 %v314_v21, %v236_v7 }
  0x3e   : > { %s721_s28 = sld [smem:[#allocation4 + %s209_s11]]  ;;  %v249_v31 = vrot.slane %v247_v24, 1  ;;  %v255_v32 = vmul.f32 %v254_v28, %v233_v10  ;;  %v256_v33 = vstv %s681_s20  ;;  %v323_v38 = vmul.f32 %v314_v21, %v694_v18 }
  0x3f   : > { %s726_s29 = sld [smem:[#allocation4 + %s211_s15]]  ;;  %v243_v35 = vadd.f32 %v692_v17, %v241_v27  ;;  %v257_v36 = vmul.f32 %v256_v33, %v233_v10  ;;  %v319_v37 = vrot.slane %v317_v30, 1  ;;  %v262_v40 = vstv %s686_s22 }
  0x40   : > { %s732_s30 = sld [smem:[#allocation4 + %s213_s17]]  ;;  %v251_v39 = vadd.f32 %v249_v31, %v245_v23  ;;  %v270_v41 = vstv %s689_s23  ;;  %v324_v42 = vmul.f32 %v314_v21, %v700_v20  ;;  %v330_v46 = vmul.f32 %v315_v34, %v234_v6 }
  0x41   : > { %s739_s4 = sld [smem:[#allocation4 + %s215_s19]]  ;;  %v259_v43 = vrot.slane %v257_v36, 1  ;;  %v267_v44 = vmul.f32 %v265_v26, %v243_v35  ;;  %v321_v45 = vadd.f32 %v319_v37, %v316_v29  ;;  %v272_v48 = vstv %s698_s24 }
  0x42   : > { %s743_s5 = sld [smem:[#allocation4 + %s217_s21]]  ;;  %v253_v47 = vadd.f32 %v712_v25, %v251_v39  ;;  %v326_v49 = vrot.slane %v324_v42, 1  ;;  %v331_v50 = vmul.f32 %v315_v34, %v236_v7  ;;  %v275_v53 = vstv %s707_s25 }
  0x43   : > { %v261_v51 = vadd.f32 %v259_v43, %v255_v32  ;;  %v271_v52 = vmul.f32 %v270_v41, %v267_v44  ;;  %v278_v54 = vstv %s716_s27  ;;  %v322_v62 = vadd.f32 %v321_v45, %v692_v17 }
  0x44   : > { %v268_v55 = vmul.f32 %v265_v26, %v253_v47  ;;  %v279_v56 = vmul.f32 %v278_v54, %v267_v44  ;;  %v280_v57 = vstv %s721_s28  ;;  %v328_v58 = vadd.f32 %v326_v49, %v323_v38 }
  0x45   : > { %v520_v59 = vpop.eup %519  ;;  %v263_v60 = vadd.f32 %v262_v40, %v261_v51  ;;  %v283_v61 = vstv %s726_s29  ;;  %v333_v63 = vrot.slane %v331_v50, 1  ;;  %v337_v24 = vmul.f32 %v315_v34, %v694_v18 }
  0x46   : > { %v273_v0 = vmul.f32 %v272_v48, %v268_v55  ;;  %v281_v3 = vmul.f32 %v280_v57, %v268_v55  ;;  %v286_v4 = vstv %s732_s30  ;;  %v297_v5 = vrot.slane %v520_v59, 5 }
  0x47   : > { %v269_v6 = vmul.f32 %v265_v26, %v263_v60  ;;  %v287_v7 = vmul.f32 %v286_v4, %v267_v44  ;;  %v288_v8 = vstv %s739_s4  ;;  %v329_v9 = vadd.f32 %v328_v58, %v712_v25 }
  0x48   : > { %v274_v10 = vadd.f32 %v273_v0, %v271_v52  ;;  %v282_v11 = vadd.f32 %v281_v3, %v279_v56  ;;  %v289_v12 = vmul.f32 %v288_v8, %v268_v55  ;;  %v291_v13 = vstv %s743_s5 }
  0x49   : > { %v276_v14 = vmul.f32 %v275_v53, %v269_v6  ;;  %v284_v15 = vmul.f32 %v283_v61, %v269_v6  ;;  %v292_v16 = vmul.f32 %v291_v13, %v269_v6  ;;  %v299_v19 = vmul.f32 %v297_v5, %v655_v1 }
  0x4a   : > { %v290_v21 = vadd.f32 %v289_v12, %v287_v7  ;;  %v335_v23 = vadd.f32 %v333_v63, %v330_v46  ;;  %v338_v27 = vmul.f32 %v315_v34, %v700_v20  ;;  %v348_v30 = vrot.slane %v322_v62, 2 }
  0x4b   : > { %v277_v26 = vadd.f32 %v276_v14, %v274_v10  ;;  %v285_v28 = vadd.f32 %v284_v15, %v282_v11  ;;  %v301_v29 = vmul.f32 0.5, %v299_v19  ;;  %v351_v33 = vrot.slane %v329_v9, 1 }
  0x4c   : > { %v293_v31 = vadd.f32 %v292_v16, %v290_v21  ;;  %v340_v32 = vrot.slane %v338_v27, 1  ;;  %v336_v36 = vadd.f32 %v335_v23, %v692_v17  ;;  %v362_v37 = vrot.slane %v299_v19, 6 }
  0x4d   : > { %v303_v35 = vrot.slane %v301_v29, 3  ;;  %v300_v1 = vmul.f32 %v297_v5, %v657_v2  ;;  %v365_v18 = vrot.slane %v277_v26, 3  ;;  %v378_v20 = vsel %vm377_vm1, %v703_v22, %v348_v30 }
  0x4e   : > { %v342_v38 = vadd.f32 %v340_v32, %v337_v24  ;;  %v380_v39 = vsel %vm379_vm2, %v378_v20, %v351_v33  ;;  %v371_v41 = vrot.slane %v293_v31, 1  ;;  %v357_v43 = vrot.slane %v299_v19, 1 }
  0x4f   : > { %v305_v34 = vadd.f32 %v303_v35, %v285_v28  ;;  %v389_v42 = vsel %vm375_vm0, %v362_v37, %v365_v18  ;;  %v382_v44 = vsel %vm381_vm3, %v380_v39, %v336_v36  ;;  %v360_v46 = vrot.slane %v300_v1, 1 }
  0x50   : > { %v343_v40 = vadd.f32 %v342_v38, %v712_v25  ;;  %v373_v47 = vrot.slane %v657_v2, 5 }
  0x51   : > { %v368_v17 = vrot.slane %v305_v34, 2 }
  0x52   : > { %v354_v45 = vrot.slane %v343_v40, 7 }
  0x53   : > { %v390_v22 = vsel %vm377_vm1, %v389_v42, %v368_v17 }
  0x54   : > { %v384_v25 = vsel %vm383_vm4, %v382_v44, %v354_v45  ;;  %v391_v48 = vsel %vm379_vm2, %v390_v22, %v371_v41 }
  0x55   : > { %v386_v49 = vsel %vm385_vm5, %v384_v25, %v357_v43  ;;  %v392_v50 = vsel %vm381_vm3, %v391_v48, 0.0 }
  0x56   : > { %v388_v51 = vsel %vm387_vm6, %v386_v49, %v360_v46  ;;  %v393_v52 = vsel %vm383_vm4, %v392_v50, %v373_v47 }
  0x57   : > { %394 = vst [vmem:[%s197_s8] sm:$0xff] %v388_v51  ;;  %395 = vst [vmem:[%s197_s8 + $0x8] sm:$0x3f] %v393_v52 }
  0x58 PF: > { %s15_s12 = sadd.s32 1, %s565_s12  }
  0x59   : > { %p12_p5 = scmp.ge.s32.totalorder %s15_s12, 4  }
  0x5b   :  { %14 = sbr.rel (!%p12_p5) target bundleno = 2 (0x2), region = 71 }
  0x60   :  { %417 = vsyncpa [#allocation3], 1 }
  0x61   :  { %419 = vsyncpa [#allocation3 + $0x1], 1 }
  0x62   :  { %420 = vsyncpa [#allocation5], 1 }

</bundles_post_ra>
